<compile_context>
chip_gen: v6e
topology: v6e:2x2x1
jax: 0.10.0
libtpu: 0.0.40
codegen_flags: <defaults>
</compile_context>

<pallas_src>
import functools
import math

import jax
import jax.numpy as jnp
from jax.experimental import pallas as pl
from jax.experimental.pallas import tpu as pltpu


def _round_up(x, m):
    return ((x + m - 1) // m) * m


def _lcm(a, b):
    return a * b // math.gcd(a, b)


def _compute_dtype_for(in_dtype):
    """bf16 stays bf16 on chips with a bf16 vector path; otherwise f32."""
    if jnp.dtype(in_dtype) != jnp.dtype(jnp.bfloat16):
        return jnp.float32
    try:
        kind = jax.devices()[0].device_kind.lower()
    except Exception:
        return jnp.float32
    if any(v in kind for v in ('v2', 'v3', 'v4', 'v5')):
        return jnp.float32          # no native bf16 VPU -> upcast (v5e and older)
    return jnp.bfloat16


def _fine_matching_kernel(s2_ref, g_ref, f0_ref, f1_ref, side_ref, out_ref, *,
                          WW, WWC, N1, L0, softmax_temp, compute_dtype):
    """One tile of TM matches.

    s2_ref:   [WWC, N1]  0/1 segment matrix: column w collects channels of window w
    g_ref:    [N1, 128]  columns 0..4 = [1, gx, gy, gx^2, gy^2] (rows >= WW are 0)
    f0_ref:   [TM, L0]   centre feature of image-0 window, tiled to period L0
    f1_ref:   [TM, WWC]  flat (lane-dense) view of feat_f1
    side_ref: [TM, 4]    [mkpts1_c_x, mkpts1_c_y, radius_x, radius_y]
    out_ref:  [TM, 8]    [cx, cy, std, mk1f_x, mk1f_y, 0, 0, 0]
    """
    tm = out_ref.shape[0]
    cdt = compute_dtype

    # ---- logits: dense multiply per 128-lane group + MXU segmented C-sum ----
    n_groups = (WWC + 127) // 128
    acc = jnp.zeros((tm, N1), jnp.float32)
    for q in range(n_groups):                                   # static loop
        o = q * 128
        wdt = min(128, WWC - o)
        off0 = o % L0
        x = f1_ref[:, o:o + wdt].astype(cdt)                    # [TM, wdt]
        f = f0_ref[:, off0:off0 + wdt].astype(cdt)              # [TM, wdt]
        acc = acc + jnp.dot(x * f, s2_ref[o:o + wdt, :],
                            preferred_element_type=jnp.float32)  # MXU
    logits = acc * softmax_temp                                  # [TM, N1] f32

    # ---- dense softmax + statistics ----
    lane = jax.lax.broadcasted_iota(jnp.int32, (tm, N1), 1)
    logits = jnp.where(lane < WW, logits, -jnp.inf)              # mask pad lanes
    mx = jnp.max(logits, axis=-1, keepdims=True)
    e = jnp.exp(logits - mx)                                     # pad lanes -> 0
    stat = jnp.dot(e, g_ref[...], preferred_element_type=jnp.float32)   # MXU

    s_e = stat[:, 0:1]
    sx = stat[:, 1:2]
    sy = stat[:, 2:3]
    sxx = stat[:, 3:4]
    syy = stat[:, 4:5]

    # approx reciprocal (EUP) only for the coordinates; exact for variance/std.
    inv_a = pl.reciprocal(s_e, approx=True)
    cx = sx * inv_a
    cy = sy * inv_a
    inv = 1.0 / s_e
    cxe = sx * inv
    cye = sy * inv
    var_x = sxx * inv - cxe * cxe
    var_y = syy * inv - cye * cye
    std = (jnp.sqrt(jnp.maximum(var_x, 1e-10)) +
           jnp.sqrt(jnp.maximum(var_y, 1e-10)))

    side = side_ref[...]
    mkx = side[:, 0:1] + cx * side[:, 2:3]
    mky = side[:, 1:2] + cy * side[:, 3:4]

    pad = jnp.zeros((tm, 3), jnp.float32)
    out_ref[...] = jnp.concatenate([cx, cy, std, mkx, mky, pad], axis=-1)


def cascade_fine_matching(feat_f0, feat_f1, data, coarse_level='4c', tm=None):
    """Functional equivalent of CascadeFineMatching.forward. Returns dict updates."""
    M, WW, C = feat_f0.shape
    W = int(round(math.sqrt(WW)))
    scale = float(data['hw0_i'][0]) / float(data['hw0_f'][0])
    stage = data[f'stage_{coarse_level}']
    mkpts0_c = stage['mkpts0_c']
    mkpts1_c = stage['mkpts1_c']
    Mc = int(stage['mconf'].shape[0]) if 'mconf' in stage else int(mkpts1_c.shape[0])

    if M == 0:
        return {'expec_f': jnp.zeros((0, 3), jnp.float32),
                'mkpts0_f': mkpts0_c, 'mkpts1_f': mkpts1_c}

    # Per-match pixel radius (covers the per-sample scale1 path of the module).
    if 'scale0' in data:
        scale1 = jnp.asarray(data['scale1'], jnp.float32)[jnp.asarray(stage['b_ids'])]
        if scale1.ndim == 1:
            scale1 = scale1[:, None]
        radius = jnp.broadcast_to(float(W // 2) * scale * scale1, (M, 2)).astype(jnp.float32)
    else:
        radius = jnp.full((M, 2), float(W // 2) * scale, jnp.float32)

    # Merged tiny per-match side input [M, 4] = [mk1_x, mk1_y, rad_x, rad_y].
    mk1 = jnp.asarray(mkpts1_c, jnp.float32)
    if mk1.shape[0] < M:
        mk1 = jnp.pad(mk1, ((0, M - mk1.shape[0]), (0, 0)))
    elif mk1.shape[0] > M:
        mk1 = mk1[:M]
    side = jnp.concatenate([mk1, radius], axis=-1)

    WWC = WW * C
    cdt = _compute_dtype_for(feat_f1.dtype)

    # Centre feature of image-0 window, tiled to the smallest 128-aligned period so
    # every 128-lane group of the flat f1 view multiplies an aligned slice of it.
    L0 = min(_lcm(C, 128), WWC)
    # TODO(synk): odd C (huge lcm(C, 128)) duplicates f0 up to WW times in HBM;
    # every practical C (multiple of 8) keeps L0 <= 16*C.
    f0rep = jnp.tile(feat_f0[:, WW // 2, :], (1, L0 // C))            # [M, L0]
    f1_flat = feat_f1.reshape(M, WWC)                                 # free row-major view

    # Constant matrices (resident in VMEM, fetched once).
    N1 = max(128, _round_up(WW, 128))
    k = jnp.arange(WWC, dtype=jnp.int32)
    s2 = ((k // C)[:, None] == jnp.arange(N1, dtype=jnp.int32)[None, :]).astype(cdt)
    xs = jnp.linspace(-1.0, 1.0, W, dtype=jnp.float32)                # kornia meshgrid
    widx = jnp.arange(WW)
    gx = xs[widx % W]
    gy = xs[widx // W]
    gcols = jnp.stack([jnp.ones((WW,), jnp.float32), gx, gy, gx * gx, gy * gy], axis=-1)
    gmat = jnp.zeros((N1, 128), jnp.float32).at[:WW, :5].set(gcols)

    # ---- generation-aware tiling ----
    try:
        vmem_cap = int(pltpu.get_tpu_info().vmem_capacity_bytes)
    except Exception:
        vmem_cap = 64 * 1024 * 1024                                   # v7x-safe fallback
    in_bytes = jnp.dtype(feat_f1.dtype).itemsize
    c_bytes = jnp.dtype(cdt).itemsize
    const_bytes = 2 * (WWC * N1 * c_bytes + N1 * 128 * 4)
    per_row = (WWC * 2 * in_bytes            # f1 tile, double-buffered
               + L0 * 2 * in_bytes           # f0rep tile, double-buffered
               + 2 * 128 * 4                 # side tile (lane padded)
               + (8 * N1 + 4 * 128) * 4)     # in-kernel f32 live values
    if tm is None:
        budget = max(int(vmem_cap * 0.6) - const_bytes, per_row * 8)
        tm = budget // per_row
        if M >= 256:                          # keep >= 2 grid steps (v7x has 2 TCs)
            tm = min(tm, _round_up(M, 16) // 2)
    tm = int(tm)
    tm = min(tm, 1024, _round_up(M, 8))
    tm = max(8, (tm // 8) * 8)

    grid_m = (M + tm - 1) // tm
    vmem_limit = max(32 * 1024 * 1024,
                     min(int(vmem_cap * 0.85), 100 * 1024 * 1024))

    kernel = functools.partial(
        _fine_matching_kernel, WW=WW, WWC=WWC, N1=N1, L0=L0,
        softmax_temp=1.0 / (C ** 0.5), compute_dtype=cdt)

    out = pl.pallas_call(
        kernel,
        out_shape=jax.ShapeDtypeStruct((M, 8), jnp.float32),
        grid_spec=pltpu.PrefetchScalarGridSpec(
            num_scalar_prefetch=0,
            grid=(grid_m,),
            in_specs=[
                pl.BlockSpec((WWC, N1), lambda i: (0, 0)),    # segment matrix (resident)
                pl.BlockSpec((N1, 128), lambda i: (0, 0)),    # stats matrix (resident)
                pl.BlockSpec((tm, L0), lambda i: (i, 0)),     # centre features, tiled
                pl.BlockSpec((tm, WWC), lambda i: (i, 0)),    # flat fine features (img 1)
                pl.BlockSpec((tm, 4), lambda i: (i, 0)),      # mkpts1_c + radius
            ],
            out_specs=pl.BlockSpec((tm, 8), lambda i: (i, 0)),
        ),
        compiler_params=pltpu.CompilerParams(
            dimension_semantics=("parallel",),
            vmem_limit_bytes=vmem_limit),
    )(s2, gmat, f0rep, f1_flat, side)

    expec_f = out[:, 0:3]
    mkpts1_f = out[:Mc, 3:5]
    return {'expec_f': expec_f, 'mkpts0_f': mkpts0_c, 'mkpts1_f': mkpts1_f}


def _reference(feat_f0, feat_f1, mkpts1_c, radius):
    """Plain-JAX reference mirroring the PyTorch module."""
    M, WW, C = feat_f0.shape
    W = int(round(math.sqrt(WW)))
    f0c = feat_f0[:, WW // 2, :].astype(jnp.float32)
    f1 = feat_f1.astype(jnp.float32)
    sim = jnp.einsum('mc,mrc->mr', f0c, f1)
    heat = jax.nn.softmax(sim / (C ** 0.5), axis=1)
    xs = jnp.linspace(-1.0, 1.0, W)
    ridx = jnp.arange(WW)
    grid = jnp.stack([xs[ridx % W], xs[ridx // W]], axis=-1)       # [WW, 2] (x, y)
    coords = heat @ grid                                           # [M, 2]
    var = jnp.sum(grid[None] ** 2 * heat[:, :, None], axis=1) - coords ** 2
    std = jnp.sum(jnp.sqrt(jnp.maximum(var, 1e-10)), axis=-1)
    expec_f = jnp.concatenate([coords, std[:, None]], axis=-1)
    n = mkpts1_c.shape[0]
    mkpts1_f = mkpts1_c + coords[:n] * radius[:n]
    return expec_f, mkpts1_f


def _run_case(key, M, W, C, dtype, tm, with_scale1):
    WW = W * W
    k0, k1, k2, k3, k4, k5 = jax.random.split(key, 6)
    feat_f0 = jax.random.normal(k0, (M, WW, C), dtype=dtype)
    feat_f1 = jax.random.normal(k1, (M, WW, C), dtype=dtype)
    mkpts0_c = jax.random.uniform(k2, (M, 2), dtype=jnp.float32) * 256.0
    mkpts1_c = jax.random.uniform(k3, (M, 2), dtype=jnp.float32) * 256.0
    b_ids = jax.random.randint(k4, (M,), 0, 4)
    data = {
        'hw0_i': (512, 512),
        'hw0_f': (256, 256),
        'stage_4c': {'mkpts0_c': mkpts0_c, 'mkpts1_c': mkpts1_c,
                     'mconf': jnp.ones((M,), jnp.float32), 'b_ids': b_ids},
    }
    scale = 512.0 / 256.0
    if with_scale1:
        scale1 = jax.random.uniform(k5, (4, 2), dtype=jnp.float32, minval=0.5, maxval=2.0)
        data['scale0'] = scale1   # presence of 'scale0' switches on per-match scaling
        data['scale1'] = scale1
        radius = (W // 2) * scale * scale1[b_ids]
    else:
        radius = jnp.full((M, 2), (W // 2) * scale, jnp.float32)

    out = cascade_fine_matching(feat_f0, feat_f1, data, tm=tm)
    jax.block_until_ready(out['expec_f'])
    jax.block_until_ready(out['mkpts1_f'])

    ref_expec, ref_mk1 = _reference(feat_f0.astype(jnp.float32),
                                    feat_f1.astype(jnp.float32), mkpts1_c, radius)
    assert out['expec_f'].shape == (M, 3)
    assert out['mkpts1_f'].shape == (M, 2)
    assert jnp.allclose(out['expec_f'], ref_expec, atol=5e-2, rtol=1e-2), \
        float(jnp.max(jnp.abs(out['expec_f'] - ref_expec)))
    assert jnp.allclose(out['mkpts1_f'], ref_mk1, atol=1e-1, rtol=1e-3), \
        float(jnp.max(jnp.abs(out['mkpts1_f'] - ref_mk1)))
    assert jnp.allclose(out['mkpts0_f'], mkpts0_c)


if __name__ == "__main__":
    root = jax.random.PRNGKey(0)
    k1, k2, k3 = jax.random.split(root, 3)
    # f32 features, single tile
    _run_case(k1, M=16, W=8, C=32, dtype=jnp.float32, tm=256, with_scale1=False)
    # bf16 features, multi-tile grid with a partial last block (M % tm != 0)
    # and the per-match scale1 path
    _run_case(k2, M=200, W=8, C=32, dtype=jnp.bfloat16, tm=64, with_scale1=True)
    # C with no 128-divisor (ragged last lane group) + auto tile sizing
    _run_case(k3, M=24, W=6, C=48, dtype=jnp.float32, tm=None, with_scale1=False)
    print("KERNEL_OK")
</pallas_src>

<mosaic_0001>
module attributes {stable_mosaic.version = 11 : i64} {
  func.func @_fine_matching_kernel(%arg0: i32, %arg1: memref<2048x128xf32, #tpu.memory_space<vmem>>, %arg2: memref<128x128xf32, #tpu.memory_space<vmem>>, %arg3: memref<16x128xf32, #tpu.memory_space<vmem>>, %arg4: memref<16x2048xf32, #tpu.memory_space<vmem>>, %arg5: memref<16x4xf32, #tpu.memory_space<vmem>>, %arg6: memref<16x8xf32, #tpu.memory_space<vmem>>) attributes {dimension_semantics = [#tpu.dimension_semantics<parallel>], iteration_bounds = array<i64: 1>, scalar_prefetch = 0 : i64, scratch_operands = 0 : i64, tpu.core_type = #tpu.core_type<tc>, window_params = [{pipeline_mode = #tpu.pipeline_mode<synchronous>, transform_indices = @transform_0, window_bounds = array<i64: 2048, 128>}, {pipeline_mode = #tpu.pipeline_mode<synchronous>, transform_indices = @transform_1, window_bounds = array<i64: 128, 128>}, {transform_indices = @transform_2, window_bounds = array<i64: 16, 128>}, {transform_indices = @transform_3, window_bounds = array<i64: 16, 2048>}, {transform_indices = @transform_4, window_bounds = array<i64: 16, 4>}, {transform_indices = @transform_5, window_bounds = array<i64: 16, 8>}]} {
    %cst = arith.constant 0.000000e+00 : f32
    %0 = vector.broadcast %cst : f32 to vector<16x128xf32>
    %c0 = arith.constant 0 : index
    %c0_0 = arith.constant 0 : index
    %1 = vector.load %arg4[%c0, %c0_0] : memref<16x2048xf32, #tpu.memory_space<vmem>>, vector<16x128xf32>
    %c0_1 = arith.constant 0 : index
    %c0_2 = arith.constant 0 : index
    %2 = vector.load %arg3[%c0_1, %c0_2] : memref<16x128xf32, #tpu.memory_space<vmem>>, vector<16x128xf32>
    %3 = arith.mulf %1, %2 : vector<16x128xf32>
    %c0_3 = arith.constant 0 : index
    %c0_4 = arith.constant 0 : index
    %4 = vector.load %arg1[%c0_3, %c0_4] : memref<2048x128xf32, #tpu.memory_space<vmem>>, vector<128x128xf32>
    %cst_5 = arith.constant dense<0.000000e+00> : vector<16x128xf32>
    %5 = tpu.matmul %3, %4, %cst_5 {dimension_numbers = #tpu.dot_dimension_numbers<[1], [0], [0], [1], [0, 0, 1, 1], [], []>} : vector<16x128xf32>, vector<128x128xf32>, vector<16x128xf32> -> vector<16x128xf32>
    %6 = arith.addf %0, %5 : vector<16x128xf32>
    %c0_6 = arith.constant 0 : index
    %c128 = arith.constant 128 : index
    %7 = vector.load %arg4[%c0_6, %c128] : memref<16x2048xf32, #tpu.memory_space<vmem>>, vector<16x128xf32>
    %c0_7 = arith.constant 0 : index
    %c0_8 = arith.constant 0 : index
    %8 = vector.load %arg3[%c0_7, %c0_8] : memref<16x128xf32, #tpu.memory_space<vmem>>, vector<16x128xf32>
    %9 = arith.mulf %7, %8 : vector<16x128xf32>
    %c128_9 = arith.constant 128 : index
    %c0_10 = arith.constant 0 : index
    %10 = vector.load %arg1[%c128_9, %c0_10] : memref<2048x128xf32, #tpu.memory_space<vmem>>, vector<128x128xf32>
    %cst_11 = arith.constant dense<0.000000e+00> : vector<16x128xf32>
    %11 = tpu.matmul %9, %10, %cst_11 {dimension_numbers = #tpu.dot_dimension_numbers<[1], [0], [0], [1], [0, 0, 1, 1], [], []>} : vector<16x128xf32>, vector<128x128xf32>, vector<16x128xf32> -> vector<16x128xf32>
    %12 = arith.addf %6, %11 : vector<16x128xf32>
    %c0_12 = arith.constant 0 : index
    %c256 = arith.constant 256 : index
    %13 = vector.load %arg4[%c0_12, %c256] : memref<16x2048xf32, #tpu.memory_space<vmem>>, vector<16x128xf32>
    %c0_13 = arith.constant 0 : index
    %c0_14 = arith.constant 0 : index
    %14 = vector.load %arg3[%c0_13, %c0_14] : memref<16x128xf32, #tpu.memory_space<vmem>>, vector<16x128xf32>
    %15 = arith.mulf %13, %14 : vector<16x128xf32>
    %c256_15 = arith.constant 256 : index
    %c0_16 = arith.constant 0 : index
    %16 = vector.load %arg1[%c256_15, %c0_16] : memref<2048x128xf32, #tpu.memory_space<vmem>>, vector<128x128xf32>
    %cst_17 = arith.constant dense<0.000000e+00> : vector<16x128xf32>
    %17 = tpu.matmul %15, %16, %cst_17 {dimension_numbers = #tpu.dot_dimension_numbers<[1], [0], [0], [1], [0, 0, 1, 1], [], []>} : vector<16x128xf32>, vector<128x128xf32>, vector<16x128xf32> -> vector<16x128xf32>
    %18 = arith.addf %12, %17 : vector<16x128xf32>
    %c0_18 = arith.constant 0 : index
    %c384 = arith.constant 384 : index
    %19 = vector.load %arg4[%c0_18, %c384] : memref<16x2048xf32, #tpu.memory_space<vmem>>, vector<16x128xf32>
    %c0_19 = arith.constant 0 : index
    %c0_20 = arith.constant 0 : index
    %20 = vector.load %arg3[%c0_19, %c0_20] : memref<16x128xf32, #tpu.memory_space<vmem>>, vector<16x128xf32>
    %21 = arith.mulf %19, %20 : vector<16x128xf32>
    %c384_21 = arith.constant 384 : index
    %c0_22 = arith.constant 0 : index
    %22 = vector.load %arg1[%c384_21, %c0_22] : memref<2048x128xf32, #tpu.memory_space<vmem>>, vector<128x128xf32>
    %cst_23 = arith.constant dense<0.000000e+00> : vector<16x128xf32>
    %23 = tpu.matmul %21, %22, %cst_23 {dimension_numbers = #tpu.dot_dimension_numbers<[1], [0], [0], [1], [0, 0, 1, 1], [], []>} : vector<16x128xf32>, vector<128x128xf32>, vector<16x128xf32> -> vector<16x128xf32>
    %24 = arith.addf %18, %23 : vector<16x128xf32>
    %c0_24 = arith.constant 0 : index
    %c512 = arith.constant 512 : index
    %25 = vector.load %arg4[%c0_24, %c512] : memref<16x2048xf32, #tpu.memory_space<vmem>>, vector<16x128xf32>
    %c0_25 = arith.constant 0 : index
    %c0_26 = arith.constant 0 : index
    %26 = vector.load %arg3[%c0_25, %c0_26] : memref<16x128xf32, #tpu.memory_space<vmem>>, vector<16x128xf32>
    %27 = arith.mulf %25, %26 : vector<16x128xf32>
    %c512_27 = arith.constant 512 : index
    %c0_28 = arith.constant 0 : index
    %28 = vector.load %arg1[%c512_27, %c0_28] : memref<2048x128xf32, #tpu.memory_space<vmem>>, vector<128x128xf32>
    %cst_29 = arith.constant dense<0.000000e+00> : vector<16x128xf32>
    %29 = tpu.matmul %27, %28, %cst_29 {dimension_numbers = #tpu.dot_dimension_numbers<[1], [0], [0], [1], [0, 0, 1, 1], [], []>} : vector<16x128xf32>, vector<128x128xf32>, vector<16x128xf32> -> vector<16x128xf32>
    %30 = arith.addf %24, %29 : vector<16x128xf32>
    %c0_30 = arith.constant 0 : index
    %c640 = arith.constant 640 : index
    %31 = vector.load %arg4[%c0_30, %c640] : memref<16x2048xf32, #tpu.memory_space<vmem>>, vector<16x128xf32>
    %c0_31 = arith.constant 0 : index
    %c0_32 = arith.constant 0 : index
    %32 = vector.load %arg3[%c0_31, %c0_32] : memref<16x128xf32, #tpu.memory_space<vmem>>, vector<16x128xf32>
    %33 = arith.mulf %31, %32 : vector<16x128xf32>
    %c640_33 = arith.constant 640 : index
    %c0_34 = arith.constant 0 : index
    %34 = vector.load %arg1[%c640_33, %c0_34] : memref<2048x128xf32, #tpu.memory_space<vmem>>, vector<128x128xf32>
    %cst_35 = arith.constant dense<0.000000e+00> : vector<16x128xf32>
    %35 = tpu.matmul %33, %34, %cst_35 {dimension_numbers = #tpu.dot_dimension_numbers<[1], [0], [0], [1], [0, 0, 1, 1], [], []>} : vector<16x128xf32>, vector<128x128xf32>, vector<16x128xf32> -> vector<16x128xf32>
    %36 = arith.addf %30, %35 : vector<16x128xf32>
    %c0_36 = arith.constant 0 : index
    %c768 = arith.constant 768 : index
    %37 = vector.load %arg4[%c0_36, %c768] : memref<16x2048xf32, #tpu.memory_space<vmem>>, vector<16x128xf32>
    %c0_37 = arith.constant 0 : index
    %c0_38 = arith.constant 0 : index
    %38 = vector.load %arg3[%c0_37, %c0_38] : memref<16x128xf32, #tpu.memory_space<vmem>>, vector<16x128xf32>
    %39 = arith.mulf %37, %38 : vector<16x128xf32>
    %c768_39 = arith.constant 768 : index
    %c0_40 = arith.constant 0 : index
    %40 = vector.load %arg1[%c768_39, %c0_40] : memref<2048x128xf32, #tpu.memory_space<vmem>>, vector<128x128xf32>
    %cst_41 = arith.constant dense<0.000000e+00> : vector<16x128xf32>
    %41 = tpu.matmul %39, %40, %cst_41 {dimension_numbers = #tpu.dot_dimension_numbers<[1], [0], [0], [1], [0, 0, 1, 1], [], []>} : vector<16x128xf32>, vector<128x128xf32>, vector<16x128xf32> -> vector<16x128xf32>
    %42 = arith.addf %36, %41 : vector<16x128xf32>
    %c0_42 = arith.constant 0 : index
    %c896 = arith.constant 896 : index
    %43 = vector.load %arg4[%c0_42, %c896] : memref<16x2048xf32, #tpu.memory_space<vmem>>, vector<16x128xf32>
    %c0_43 = arith.constant 0 : index
    %c0_44 = arith.constant 0 : index
    %44 = vector.load %arg3[%c0_43, %c0_44] : memref<16x128xf32, #tpu.memory_space<vmem>>, vector<16x128xf32>
    %45 = arith.mulf %43, %44 : vector<16x128xf32>
    %c896_45 = arith.constant 896 : index
    %c0_46 = arith.constant 0 : index
    %46 = vector.load %arg1[%c896_45, %c0_46] : memref<2048x128xf32, #tpu.memory_space<vmem>>, vector<128x128xf32>
    %cst_47 = arith.constant dense<0.000000e+00> : vector<16x128xf32>
    %47 = tpu.matmul %45, %46, %cst_47 {dimension_numbers = #tpu.dot_dimension_numbers<[1], [0], [0], [1], [0, 0, 1, 1], [], []>} : vector<16x128xf32>, vector<128x128xf32>, vector<16x128xf32> -> vector<16x128xf32>
    %48 = arith.addf %42, %47 : vector<16x128xf32>
    %c0_48 = arith.constant 0 : index
    %c1024 = arith.constant 1024 : index
    %49 = vector.load %arg4[%c0_48, %c1024] : memref<16x2048xf32, #tpu.memory_space<vmem>>, vector<16x128xf32>
    %c0_49 = arith.constant 0 : index
    %c0_50 = arith.constant 0 : index
    %50 = vector.load %arg3[%c0_49, %c0_50] : memref<16x128xf32, #tpu.memory_space<vmem>>, vector<16x128xf32>
    %51 = arith.mulf %49, %50 : vector<16x128xf32>
    %c1024_51 = arith.constant 1024 : index
    %c0_52 = arith.constant 0 : index
    %52 = vector.load %arg1[%c1024_51, %c0_52] : memref<2048x128xf32, #tpu.memory_space<vmem>>, vector<128x128xf32>
    %cst_53 = arith.constant dense<0.000000e+00> : vector<16x128xf32>
    %53 = tpu.matmul %51, %52, %cst_53 {dimension_numbers = #tpu.dot_dimension_numbers<[1], [0], [0], [1], [0, 0, 1, 1], [], []>} : vector<16x128xf32>, vector<128x128xf32>, vector<16x128xf32> -> vector<16x128xf32>
    %54 = arith.addf %48, %53 : vector<16x128xf32>
    %c0_54 = arith.constant 0 : index
    %c1152 = arith.constant 1152 : index
    %55 = vector.load %arg4[%c0_54, %c1152] : memref<16x2048xf32, #tpu.memory_space<vmem>>, vector<16x128xf32>
    %c0_55 = arith.constant 0 : index
    %c0_56 = arith.constant 0 : index
    %56 = vector.load %arg3[%c0_55, %c0_56] : memref<16x128xf32, #tpu.memory_space<vmem>>, vector<16x128xf32>
    %57 = arith.mulf %55, %56 : vector<16x128xf32>
    %c1152_57 = arith.constant 1152 : index
    %c0_58 = arith.constant 0 : index
    %58 = vector.load %arg1[%c1152_57, %c0_58] : memref<2048x128xf32, #tpu.memory_space<vmem>>, vector<128x128xf32>
    %cst_59 = arith.constant dense<0.000000e+00> : vector<16x128xf32>
    %59 = tpu.matmul %57, %58, %cst_59 {dimension_numbers = #tpu.dot_dimension_numbers<[1], [0], [0], [1], [0, 0, 1, 1], [], []>} : vector<16x128xf32>, vector<128x128xf32>, vector<16x128xf32> -> vector<16x128xf32>
    %60 = arith.addf %54, %59 : vector<16x128xf32>
    %c0_60 = arith.constant 0 : index
    %c1280 = arith.constant 1280 : index
    %61 = vector.load %arg4[%c0_60, %c1280] : memref<16x2048xf32, #tpu.memory_space<vmem>>, vector<16x128xf32>
    %c0_61 = arith.constant 0 : index
    %c0_62 = arith.constant 0 : index
    %62 = vector.load %arg3[%c0_61, %c0_62] : memref<16x128xf32, #tpu.memory_space<vmem>>, vector<16x128xf32>
    %63 = arith.mulf %61, %62 : vector<16x128xf32>
    %c1280_63 = arith.constant 1280 : index
    %c0_64 = arith.constant 0 : index
    %64 = vector.load %arg1[%c1280_63, %c0_64] : memref<2048x128xf32, #tpu.memory_space<vmem>>, vector<128x128xf32>
    %cst_65 = arith.constant dense<0.000000e+00> : vector<16x128xf32>
    %65 = tpu.matmul %63, %64, %cst_65 {dimension_numbers = #tpu.dot_dimension_numbers<[1], [0], [0], [1], [0, 0, 1, 1], [], []>} : vector<16x128xf32>, vector<128x128xf32>, vector<16x128xf32> -> vector<16x128xf32>
    %66 = arith.addf %60, %65 : vector<16x128xf32>
    %c0_66 = arith.constant 0 : index
    %c1408 = arith.constant 1408 : index
    %67 = vector.load %arg4[%c0_66, %c1408] : memref<16x2048xf32, #tpu.memory_space<vmem>>, vector<16x128xf32>
    %c0_67 = arith.constant 0 : index
    %c0_68 = arith.constant 0 : index
    %68 = vector.load %arg3[%c0_67, %c0_68] : memref<16x128xf32, #tpu.memory_space<vmem>>, vector<16x128xf32>
    %69 = arith.mulf %67, %68 : vector<16x128xf32>
    %c1408_69 = arith.constant 1408 : index
    %c0_70 = arith.constant 0 : index
    %70 = vector.load %arg1[%c1408_69, %c0_70] : memref<2048x128xf32, #tpu.memory_space<vmem>>, vector<128x128xf32>
    %cst_71 = arith.constant dense<0.000000e+00> : vector<16x128xf32>
    %71 = tpu.matmul %69, %70, %cst_71 {dimension_numbers = #tpu.dot_dimension_numbers<[1], [0], [0], [1], [0, 0, 1, 1], [], []>} : vector<16x128xf32>, vector<128x128xf32>, vector<16x128xf32> -> vector<16x128xf32>
    %72 = arith.addf %66, %71 : vector<16x128xf32>
    %c0_72 = arith.constant 0 : index
    %c1536 = arith.constant 1536 : index
    %73 = vector.load %arg4[%c0_72, %c1536] : memref<16x2048xf32, #tpu.memory_space<vmem>>, vector<16x128xf32>
    %c0_73 = arith.constant 0 : index
    %c0_74 = arith.constant 0 : index
    %74 = vector.load %arg3[%c0_73, %c0_74] : memref<16x128xf32, #tpu.memory_space<vmem>>, vector<16x128xf32>
    %75 = arith.mulf %73, %74 : vector<16x128xf32>
    %c1536_75 = arith.constant 1536 : index
    %c0_76 = arith.constant 0 : index
    %76 = vector.load %arg1[%c1536_75, %c0_76] : memref<2048x128xf32, #tpu.memory_space<vmem>>, vector<128x128xf32>
    %cst_77 = arith.constant dense<0.000000e+00> : vector<16x128xf32>
    %77 = tpu.matmul %75, %76, %cst_77 {dimension_numbers = #tpu.dot_dimension_numbers<[1], [0], [0], [1], [0, 0, 1, 1], [], []>} : vector<16x128xf32>, vector<128x128xf32>, vector<16x128xf32> -> vector<16x128xf32>
    %78 = arith.addf %72, %77 : vector<16x128xf32>
    %c0_78 = arith.constant 0 : index
    %c1664 = arith.constant 1664 : index
    %79 = vector.load %arg4[%c0_78, %c1664] : memref<16x2048xf32, #tpu.memory_space<vmem>>, vector<16x128xf32>
    %c0_79 = arith.constant 0 : index
    %c0_80 = arith.constant 0 : index
    %80 = vector.load %arg3[%c0_79, %c0_80] : memref<16x128xf32, #tpu.memory_space<vmem>>, vector<16x128xf32>
    %81 = arith.mulf %79, %80 : vector<16x128xf32>
    %c1664_81 = arith.constant 1664 : index
    %c0_82 = arith.constant 0 : index
    %82 = vector.load %arg1[%c1664_81, %c0_82] : memref<2048x128xf32, #tpu.memory_space<vmem>>, vector<128x128xf32>
    %cst_83 = arith.constant dense<0.000000e+00> : vector<16x128xf32>
    %83 = tpu.matmul %81, %82, %cst_83 {dimension_numbers = #tpu.dot_dimension_numbers<[1], [0], [0], [1], [0, 0, 1, 1], [], []>} : vector<16x128xf32>, vector<128x128xf32>, vector<16x128xf32> -> vector<16x128xf32>
    %84 = arith.addf %78, %83 : vector<16x128xf32>
    %c0_84 = arith.constant 0 : index
    %c1792 = arith.constant 1792 : index
    %85 = vector.load %arg4[%c0_84, %c1792] : memref<16x2048xf32, #tpu.memory_space<vmem>>, vector<16x128xf32>
    %c0_85 = arith.constant 0 : index
    %c0_86 = arith.constant 0 : index
    %86 = vector.load %arg3[%c0_85, %c0_86] : memref<16x128xf32, #tpu.memory_space<vmem>>, vector<16x128xf32>
    %87 = arith.mulf %85, %86 : vector<16x128xf32>
    %c1792_87 = arith.constant 1792 : index
    %c0_88 = arith.constant 0 : index
    %88 = vector.load %arg1[%c1792_87, %c0_88] : memref<2048x128xf32, #tpu.memory_space<vmem>>, vector<128x128xf32>
    %cst_89 = arith.constant dense<0.000000e+00> : vector<16x128xf32>
    %89 = tpu.matmul %87, %88, %cst_89 {dimension_numbers = #tpu.dot_dimension_numbers<[1], [0], [0], [1], [0, 0, 1, 1], [], []>} : vector<16x128xf32>, vector<128x128xf32>, vector<16x128xf32> -> vector<16x128xf32>
    %90 = arith.addf %84, %89 : vector<16x128xf32>
    %c0_90 = arith.constant 0 : index
    %c1920 = arith.constant 1920 : index
    %91 = vector.load %arg4[%c0_90, %c1920] : memref<16x2048xf32, #tpu.memory_space<vmem>>, vector<16x128xf32>
    %c0_91 = arith.constant 0 : index
    %c0_92 = arith.constant 0 : index
    %92 = vector.load %arg3[%c0_91, %c0_92] : memref<16x128xf32, #tpu.memory_space<vmem>>, vector<16x128xf32>
    %93 = arith.mulf %91, %92 : vector<16x128xf32>
    %c1920_93 = arith.constant 1920 : index
    %c0_94 = arith.constant 0 : index
    %94 = vector.load %arg1[%c1920_93, %c0_94] : memref<2048x128xf32, #tpu.memory_space<vmem>>, vector<128x128xf32>
    %cst_95 = arith.constant dense<0.000000e+00> : vector<16x128xf32>
    %95 = tpu.matmul %93, %94, %cst_95 {dimension_numbers = #tpu.dot_dimension_numbers<[1], [0], [0], [1], [0, 0, 1, 1], [], []>} : vector<16x128xf32>, vector<128x128xf32>, vector<16x128xf32> -> vector<16x128xf32>
    %96 = arith.addf %90, %95 : vector<16x128xf32>
    %cst_96 = arith.constant 0.176776692 : f32
    %97 = vector.broadcast %cst_96 : f32 to vector<16x128xf32>
    %98 = arith.mulf %96, %97 : vector<16x128xf32>
    %99 = tpu.iota {dimensions = array<i32: 1>} : vector<16x128xi32>
    %c64_i32 = arith.constant 64 : i32
    %100 = vector.broadcast %c64_i32 : i32 to vector<16x128xi32>
    %101 = arith.cmpi slt, %99, %100 : vector<16x128xi32>
    %cst_97 = arith.constant 0xFF800000 : f32
    %102 = vector.broadcast %cst_97 : f32 to vector<16x128xf32>
    %103 = arith.select %101, %98, %102 : vector<16x128xi1>, vector<16x128xf32>
    %cst_98 = arith.constant dense<0xFF800000> : vector<16xf32>
    %104 = vector.multi_reduction <maximumf>, %103, %cst_98 [1] : vector<16x128xf32> to vector<16xf32>
    %105 = vector.shape_cast %104 : vector<16xf32> to vector<16x1xf32>
    %106 = vector.broadcast %105 : vector<16x1xf32> to vector<16x128xf32>
    %107 = arith.subf %103, %106 : vector<16x128xf32>
    %108 = math.exp %107 : vector<16x128xf32>
    %c0_99 = arith.constant 0 : index
    %c0_100 = arith.constant 0 : index
    %109 = vector.load %arg2[%c0_99, %c0_100] : memref<128x128xf32, #tpu.memory_space<vmem>>, vector<128x128xf32>
    %cst_101 = arith.constant dense<0.000000e+00> : vector<16x128xf32>
    %110 = tpu.matmul %108, %109, %cst_101 {dimension_numbers = #tpu.dot_dimension_numbers<[1], [0], [0], [1], [0, 0, 1, 1], [], []>} : vector<16x128xf32>, vector<128x128xf32>, vector<16x128xf32> -> vector<16x128xf32>
    %111 = vector.extract_strided_slice %110 {offsets = [0, 0], sizes = [16, 1], strides = [1, 1]} : vector<16x128xf32> to vector<16x1xf32>
    %112 = vector.extract_strided_slice %110 {offsets = [0, 1], sizes = [16, 1], strides = [1, 1]} : vector<16x128xf32> to vector<16x1xf32>
    %113 = vector.extract_strided_slice %110 {offsets = [0, 2], sizes = [16, 1], strides = [1, 1]} : vector<16x128xf32> to vector<16x1xf32>
    %114 = vector.extract_strided_slice %110 {offsets = [0, 3], sizes = [16, 1], strides = [1, 1]} : vector<16x128xf32> to vector<16x1xf32>
    %115 = vector.extract_strided_slice %110 {offsets = [0, 4], sizes = [16, 1], strides = [1, 1]} : vector<16x128xf32> to vector<16x1xf32>
    %116 = tpu.reciprocal %111 {approx = true} : vector<16x1xf32> -> vector<16x1xf32>
    %117 = arith.mulf %112, %116 : vector<16x1xf32>
    %118 = arith.mulf %113, %116 : vector<16x1xf32>
    %cst_102 = arith.constant 1.000000e+00 : f32
    %119 = vector.broadcast %cst_102 : f32 to vector<16x1xf32>
    %120 = arith.divf %119, %111 : vector<16x1xf32>
    %121 = arith.mulf %112, %120 : vector<16x1xf32>
    %122 = arith.mulf %113, %120 : vector<16x1xf32>
    %123 = arith.mulf %114, %120 : vector<16x1xf32>
    %124 = arith.mulf %121, %121 : vector<16x1xf32>
    %125 = arith.subf %123, %124 : vector<16x1xf32>
    %126 = arith.mulf %115, %120 : vector<16x1xf32>
    %127 = arith.mulf %122, %122 : vector<16x1xf32>
    %128 = arith.subf %126, %127 : vector<16x1xf32>
    %cst_103 = arith.constant 1.000000e-10 : f32
    %129 = vector.broadcast %cst_103 : f32 to vector<16x1xf32>
    %130 = arith.maximumf %125, %129 : vector<16x1xf32>
    %131 = math.sqrt %130 : vector<16x1xf32>
    %cst_104 = arith.constant 1.000000e-10 : f32
    %132 = vector.broadcast %cst_104 : f32 to vector<16x1xf32>
    %133 = arith.maximumf %128, %132 : vector<16x1xf32>
    %134 = math.sqrt %133 : vector<16x1xf32>
    %135 = arith.addf %131, %134 : vector<16x1xf32>
    %c0_105 = arith.constant 0 : index
    %c0_106 = arith.constant 0 : index
    %136 = vector.load %arg5[%c0_105, %c0_106] : memref<16x4xf32, #tpu.memory_space<vmem>>, vector<16x4xf32>
    %137 = vector.extract_strided_slice %136 {offsets = [0, 0], sizes = [16, 1], strides = [1, 1]} : vector<16x4xf32> to vector<16x1xf32>
    %138 = vector.extract_strided_slice %136 {offsets = [0, 2], sizes = [16, 1], strides = [1, 1]} : vector<16x4xf32> to vector<16x1xf32>
    %139 = arith.mulf %117, %138 : vector<16x1xf32>
    %140 = arith.addf %137, %139 : vector<16x1xf32>
    %141 = vector.extract_strided_slice %136 {offsets = [0, 1], sizes = [16, 1], strides = [1, 1]} : vector<16x4xf32> to vector<16x1xf32>
    %142 = vector.extract_strided_slice %136 {offsets = [0, 3], sizes = [16, 1], strides = [1, 1]} : vector<16x4xf32> to vector<16x1xf32>
    %143 = arith.mulf %118, %142 : vector<16x1xf32>
    %144 = arith.addf %141, %143 : vector<16x1xf32>
    %cst_107 = arith.constant 0.000000e+00 : f32
    %145 = vector.broadcast %cst_107 : f32 to vector<16x3xf32>
    %146 = tpu.concatenate %117, %118, %135, %140, %144, %145 in 1 : vector<16x1xf32>, vector<16x1xf32>, vector<16x1xf32>, vector<16x1xf32>, vector<16x1xf32>, vector<16x3xf32> -> vector<16x8xf32>
    %c0_108 = arith.constant 0 : index
    %c0_109 = arith.constant 0 : index
    %147 = vector.load %arg6[%c0_108, %c0_109] : memref<16x8xf32, #tpu.memory_space<vmem>>, vector<16x8xf32>
    tpu.vector_store %arg6[%c0_108, %c0_109], %146 {strides = array<i32>} : memref<16x8xf32, #tpu.memory_space<vmem>>, vector<16x8xf32>,
    return
  }
  func.func @transform_0(%arg0: i32) -> (i32, i32) {
    %c0_i32 = arith.constant 0 : i32
    %c0_i32_0 = arith.constant 0 : i32
    %c0_i32_1 = arith.constant 0 : i32
    return %c0_i32, %c0_i32_0 : i32, i32
  }
  func.func @transform_1(%arg0: i32) -> (i32, i32) {
    %c0_i32 = arith.constant 0 : i32
    %c0_i32_0 = arith.constant 0 : i32
    %c0_i32_1 = arith.constant 0 : i32
    return %c0_i32, %c0_i32_0 : i32, i32
  }
  func.func @transform_2(%arg0: i32) -> (i32, i32) {
    %c0_i32 = arith.constant 0 : i32
    %c0_i32_0 = arith.constant 0 : i32
    return %arg0, %c0_i32 : i32, i32
  }
  func.func @transform_3(%arg0: i32) -> (i32, i32) {
    %c0_i32 = arith.constant 0 : i32
    %c0_i32_0 = arith.constant 0 : i32
    return %arg0, %c0_i32 : i32, i32
  }
  func.func @transform_4(%arg0: i32) -> (i32, i32) {
    %c0_i32 = arith.constant 0 : i32
    %c0_i32_0 = arith.constant 0 : i32
    return %arg0, %c0_i32 : i32, i32
  }
  func.func @transform_5(%arg0: i32) -> (i32, i32) {
    %c0_i32 = arith.constant 0 : i32
    %c0_i32_0 = arith.constant 0 : i32
    return %arg0, %c0_i32 : i32, i32
  }
}

</mosaic_0001>

<bundles_post_ra>
// kernel: tpu_custom_call.1
= control target key start
LH: loop header
LB: loop body
LE: loop exit
PB: predicated region body
PF: predicated region fallthrough
CT: control target
= control target key end

     0   :  { %10 = vsyncpa [#allocation3], 0  ;;  %s3109_s0 = inlined_call_operand.hbm [shape: f32[2048,128], index: 0, kind: input, shape index: {}]   ;;  %s3110_s1 = inlined_call_operand.hbm [shape: f32[128,128], index: 1, kind: input, shape index: {}]   ;;  %s3111_s2 = inlined_call_operand.vmem [shape: f32[16,128], index: 2, kind: input, shape index: {}]   ;;  %s3112_s3 = inlined_call_operand.hbm [shape: f32[16,2048], index: 3, kind: input, shape index: {}]   ;;  %s3113_s4 = inlined_call_operand.vmem [shape: f32[16,4], index: 4, kind: input, shape index: {}]   ;;  %s3114_s5 = inlined_call_operand.vmem [shape: f32[16,8], index: 5, kind: output, shape index: {}]  }
   0x1   :  { %11 = vsyncpa [#allocation5], 0  ;;  %s2935_s18 = smov [#allocation4]   ;;  %s2936_s20 = smov [#allocation2]  }
   0x2   :  { %s29_s19 = sshll.u32 %s2935_s18, 4  ;;  %s17_s21 = sshll.u32 %s2936_s20, 4  ;;  %s30_s19 = int_to_ptr.vmem [resolvable:$true] %s29_s19  ;;  %s18_s21 = int_to_ptr.vmem [resolvable:$true] %s17_s21 }
   0x3   :  { %s2879_s22 = scalar_lea.vmem %s30_s19, 2048  ;;  %p2884_p1 = scmp.lt.s32.totalorder %s30_s19, %s30_s19 }
   0x4   :  { %p2880_p0 = scmp.ne.s32.totalorder %s30_s19, %s2879_s22  ;;  %p2885_p2 = scmp.lt.s32.totalorder %s2879_s22, %s2879_s22 }
   0x6   :  { %p2886_p3 = por %p2885_p2, %p2884_p1 }
   0x8   :  { %p2887_p4 = pnand %p2886_p3, %p2880_p0 }
   0xa   :  { %2890 = shalt.err (!%p2887_p4)
}
   0xb   :  { %s2937_s23 = smov 128   ;;  %s2938_s24 = smov 8  }
   0xc   :  { %35 = dma.hbm_to_vmem [thread:$0]  %s3110_s1, 2048, %s30_s19, [#allocation5], %s2937_s23, %s2937_s23, %s2938_s24  }
   0xd   :  { %s2899_s27 = scalar_lea.vmem %s18_s21, 32768  ;;  %p2904_p6 = scmp.lt.s32.totalorder %s18_s21, %s18_s21 }
   0xe   :  { %p2900_p5 = scmp.ne.s32.totalorder %s18_s21, %s2899_s27  ;;  %p2905_p7 = scmp.lt.s32.totalorder %s2899_s27, %s2899_s27 }
  0x10   :  { %p2906_p8 = por %p2905_p7, %p2904_p6 }
  0x12   :  { %p2907_p9 = pnand %p2906_p8, %p2900_p5 }
  0x14   :  { %2910 = shalt.err (!%p2907_p9)
}
  0x15   :  { %23 = dma.hbm_to_vmem [thread:$0]  %s3109_s0, 32768, %s18_s21, [#allocation3], %s2937_s23, %s2937_s23, %s2938_s24  }
  0x16   :  { %s2939_s30 = smov [#allocation6]  }
  0x17   :  { %s43_s6 = sshll.u32 %s2939_s30, 4  ;;  %s44_s6 = int_to_ptr.vmem [resolvable:$true] %s43_s6 }
  0x18   :  { %s2919_s7 = scalar_lea.vmem %s44_s6, 4096  ;;  %p2924_p11 = scmp.lt.s32.totalorder %s44_s6, %s44_s6 }
  0x19   :  { %p2920_p10 = scmp.ne.s32.totalorder %s44_s6, %s2919_s7  ;;  %p2925_p12 = scmp.lt.s32.totalorder %s2919_s7, %s2919_s7 }
  0x1b   :  { %p2926_p13 = por %p2925_p12, %p2924_p11 }
  0x1d   :  { %p2927_p0 = pnand %p2926_p13, %p2920_p10 }
  0x1f   :  { %2930 = shalt.err (!%p2927_p0)
}
  0x20   :  { %s2940_s1 = smov 2048  }
  0x21   :  { %49 = dma.hbm_to_vmem [thread:$0]  %s3112_s3, 4096, %s44_s6, [#allocation5], %s2940_s1, %s2940_s1, %s2937_s23  }
  0x22   :  { %2931 = dma.done.wait [#allocation3], 32768  }
  0x23   :  { %2932 = vsyncadd [#allocation3], 4294934528 }
  0x24   :  { %2933 = dma.done.wait [#allocation5], 6144  }
  0x25   :  { %2934 = vsyncadd [#allocation5], 4294961152  ;;  %v102_v0 = vld [vmem:[#allocation2 + $0xf8] sm:$0xff]  ;;  %v101_v2 = vld [vmem:[#allocation2 + $0xf0] sm:$0xff]  ;;  %s2942_s16 = smov 2   ;;  %s2943_s19 = smov 127  }
  0x26   :  { %v82_v1 = vld [vmem:[#allocation2 + $0x78] sm:$0xff]  ;;  %2247 = vmatprep.subr.mxu0 %v102_v0  ;;  %v81_v3 = vld [vmem:[#allocation2 + $0x70] sm:$0xff]  ;;  %v100_v4 = vld [vmem:[#allocation2 + $0xe8] sm:$0xff]  ;;  %s2944_s20 = smov 4   ;;  %s2945_s21 = smov 3   ;;  %vm1917_vm9 = vcmask 7168  }
  0x27   :  { %2282 = vmatprep.subr.mxu1 %v82_v1  ;;  %2248 = vmatpush3.msra.mxu0 %v102_v0  ;;  %v80_v5 = vld [vmem:[#allocation2 + $0x68] sm:$0xff]  ;;  %v99_v6 = vld [vmem:[#allocation2 + $0xe0] sm:$0xff]  ;;  %v98_v8 = vld [vmem:[#allocation2 + $0xd8] sm:$0xff]  ;;  %vm1920_vm10 = vcmask 15360   ;;  %vm1923_vm11 = vcmask 23552   ;;  %vm1926_vm12 = vcmask 31744  }
  0x28   :  { %2283 = vmatpush3.msra.mxu1 %v82_v1  ;;  %2249 = vmatprep.subr.mxu0 %v101_v2  ;;  %v79_v7 = vld [vmem:[#allocation2 + $0x60] sm:$0xff]  ;;  %v78_v9 = vld [vmem:[#allocation2 + $0x58] sm:$0xff]  ;;  %v97_v10 = vld [vmem:[#allocation2 + $0xd0] sm:$0xff]  ;;  %vm1929_vm13 = vcmask 39936   ;;  %vm1932_vm14 = vcmask 64512  }
  0x29   :  { %2284 = vmatprep.subr.mxu1 %v81_v3  ;;  %2250 = vmatpush3.msra.mxu0 %v101_v2  ;;  %v77_v11 = vld [vmem:[#allocation2 + $0x50] sm:$0xff]  ;;  %v96_v12 = vld [vmem:[#allocation2 + $0xc8] sm:$0xff]  ;;  %v95_v14 = vld [vmem:[#allocation2 + $0xc0] sm:$0xff] }
  0x2a   :  { %2285 = vmatpush3.msra.mxu1 %v81_v3  ;;  %2251 = vmatprep.subr.mxu0 %v100_v4  ;;  %v76_v13 = vld [vmem:[#allocation2 + $0x48] sm:$0xff]  ;;  %v75_v15 = vld [vmem:[#allocation2 + $0x40] sm:$0xff]  ;;  %v94_v16 = vld [vmem:[#allocation2 + $0xb8] sm:$0xff] }
  0x2b   :  { %2286 = vmatprep.subr.mxu1 %v80_v5  ;;  %2252 = vmatpush3.msra.mxu0 %v100_v4  ;;  %v74_v17 = vld [vmem:[#allocation2 + $0x38] sm:$0xff]  ;;  %v93_v18 = vld [vmem:[#allocation2 + $0xb0] sm:$0xff]  ;;  %v92_v20 = vld [vmem:[#allocation2 + $0xa8] sm:$0xff] }
  0x2c   :  { %2287 = vmatpush3.msra.mxu1 %v80_v5  ;;  %2253 = vmatprep.subr.mxu0 %v99_v6  ;;  %v73_v19 = vld [vmem:[#allocation2 + $0x30] sm:$0xff]  ;;  %v72_v21 = vld [vmem:[#allocation2 + $0x28] sm:$0xff]  ;;  %v91_v22 = vld [vmem:[#allocation2 + $0xa0] sm:$0xff] }
  0x2d   :  { %2288 = vmatprep.subr.mxu1 %v79_v7  ;;  %2254 = vmatpush3.msra.mxu0 %v99_v6  ;;  %v71_v23 = vld [vmem:[#allocation2 + $0x20] sm:$0xff]  ;;  %v90_v24 = vld [vmem:[#allocation2 + $0x98] sm:$0xff]  ;;  %v89_v26 = vld [vmem:[#allocation2 + $0x90] sm:$0xff] }
  0x2e   :  { %2289 = vmatpush3.msra.mxu1 %v79_v7  ;;  %2255 = vmatprep.subr.mxu0 %v98_v8  ;;  %v70_v25 = vld [vmem:[#allocation2 + $0x18] sm:$0xff]  ;;  %v69_v27 = vld [vmem:[#allocation2 + $0x10] sm:$0xff]  ;;  %v2988_v28 = vld [vmem:[%s3111_s2] sm:$0xff] }
  0x2f   :  { %2290 = vmatprep.subr.mxu1 %v78_v9  ;;  %2256 = vmatpush3.msra.mxu0 %v98_v8  ;;  %v83_v29 = vld [vmem:[#allocation6 + $0x8] sm:$0xff]  ;;  %v61_v32 = vld [vmem:[#allocation6] sm:$0xff]  ;;  %v272_v42 = vld [vmem:[#allocation2 + $0x178] sm:$0xff] }
  0x30   :  { %2291 = vmatpush3.msra.mxu1 %v78_v9  ;;  %2257 = vmatprep.subr.mxu0 %v97_v10  ;;  %v88_v30 = vld [vmem:[#allocation2 + $0x88] sm:$0xff]  ;;  %v62_v35 = vld [vmem:[#allocation6 + $0x80] sm:$0xff]  ;;  %v85_v38 = vmul.f32 %v83_v29, %v2988_v28  ;;  %v65_v39 = vmul.f32 %v2988_v28, %v61_v32  ;;  %v369_v43 = vld [vmem:[#allocation2 + $0x1f8] sm:$0xff] }
  0x31   :  { %2292 = vmatprep.subr.mxu1 %v77_v11  ;;  %2258 = vmatpush3.msra.mxu0 %v97_v10  ;;  %v68_v31 = vld [vmem:[#allocation2 + $0x8] sm:$0xff]  ;;  %v87_v36 = vld [vmem:[#allocation2 + $0x80] sm:$0xff]  ;;  %v271_v44 = vld [vmem:[#allocation2 + $0x170] sm:$0xff] }
  0x32   :  { %2293 = vmatpush3.msra.mxu1 %v77_v11  ;;  %2259 = vmatprep.subr.mxu0 %v96_v12  ;;  %v2993_v33 = vld [vmem:[%s3111_s2 + $0x8] sm:$0xff]  ;;  %v67_v37 = vld [vmem:[#allocation2] sm:$0xff]  ;;  %v368_v45 = vld [vmem:[#allocation2 + $0x1f0] sm:$0xff] }
  0x33   :  { %2294 = vmatprep.subr.mxu1 %v76_v13  ;;  %2260 = vmatpush3.msra.mxu0 %v96_v12  ;;  %v84_v34 = vld [vmem:[#allocation6 + $0x88] sm:$0xff]  ;;  %v66_v41 = vmul.f32 %v2993_v33, %v62_v35  ;;  %v269_v48 = vld [vmem:[#allocation2 + $0x160] sm:$0xff]  ;;  %v268_v50 = vld [vmem:[#allocation2 + $0x158] sm:$0xff] }
  0x34   :  { %2295 = vmatpush3.msra.mxu1 %v76_v13  ;;  %2261 = vmatprep.subr.mxu0 %v95_v14  ;;  %v86_v40 = vmul.f32 %v84_v34, %v2993_v33  ;;  %v270_v46 = vld [vmem:[#allocation2 + $0x168] sm:$0xff]  ;;  %v366_v49 = vld [vmem:[#allocation2 + $0x1e0] sm:$0xff]  ;;  %v365_v51 = vld [vmem:[#allocation2 + $0x1d8] sm:$0xff] }
  0x35   :  { %2296 = vmatprep.subr.mxu1 %v75_v15  ;;  %2262 = vmatpush3.msra.mxu0 %v95_v14  ;;  %v367_v47 = vld [vmem:[#allocation2 + $0x1e8] sm:$0xff]  ;;  %v267_v52 = vld [vmem:[#allocation2 + $0x150] sm:$0xff]  ;;  %v265_v56 = vld [vmem:[#allocation2 + $0x140] sm:$0xff] }
  0x36   :  { %2297 = vmatpush3.msra.mxu1 %v75_v15  ;;  %2263 = vmatprep.subr.mxu0 %v94_v16  ;;  %v364_v53 = vld [vmem:[#allocation2 + $0x1d0] sm:$0xff]  ;;  %v266_v54 = vld [vmem:[#allocation2 + $0x148] sm:$0xff]  ;;  %v362_v57 = vld [vmem:[#allocation2 + $0x1c0] sm:$0xff] }
  0x37   :  { %2298 = vmatprep.subr.mxu1 %v74_v17  ;;  %2264 = vmatpush3.msra.mxu0 %v94_v16  ;;  %v363_v55 = vld [vmem:[#allocation2 + $0x1c8] sm:$0xff]  ;;  %v264_v58 = vld [vmem:[#allocation2 + $0x138] sm:$0xff]  ;;  %v263_v60 = vld [vmem:[#allocation2 + $0x130] sm:$0xff] }
  0x38   :  { %2299 = vmatpush3.msra.mxu1 %v74_v17  ;;  %2265 = vmatprep.subr.mxu0 %v93_v18  ;;  %v361_v59 = vld [vmem:[#allocation2 + $0x1b8] sm:$0xff]  ;;  %v360_v61 = vld [vmem:[#allocation2 + $0x1b0] sm:$0xff]  ;;  %v262_v62 = vld [vmem:[#allocation2 + $0x128] sm:$0xff] }
  0x39   :  { %2300 = vmatprep.subr.mxu1 %v73_v19  ;;  %2266 = vmatpush3.msra.mxu0 %v93_v18  ;;  %v359_v63 = vld [vmem:[#allocation2 + $0x1a8] sm:$0xff]  ;;  %v261_v0 = vld [vmem:[#allocation2 + $0x120] sm:$0xff]  ;;  %v260_v2 = vld [vmem:[#allocation2 + $0x118] sm:$0xff] }
  0x3a   :  { %2301 = vmatpush3.msra.mxu1 %v73_v19  ;;  %2267 = vmatprep.subr.mxu0 %v92_v20  ;;  %v358_v1 = vld [vmem:[#allocation2 + $0x1a0] sm:$0xff]  ;;  %v357_v3 = vld [vmem:[#allocation2 + $0x198] sm:$0xff]  ;;  %v259_v4 = vld [vmem:[#allocation2 + $0x110] sm:$0xff] }
  0x3b   :  { %2302 = vmatprep.subr.mxu1 %v72_v21  ;;  %2268 = vmatpush3.msra.mxu0 %v92_v20  ;;  %v356_v5 = vld [vmem:[#allocation2 + $0x190] sm:$0xff]  ;;  %v258_v7 = vld [vmem:[#allocation2 + $0x108] sm:$0xff]  ;;  %v350_v10 = vld [vmem:[#allocation6 + $0x18] sm:$0xff] }
  0x3c   :  { %2303 = vmatpush3.msra.mxu1 %v72_v21  ;;  %2269 = vmatprep.subr.mxu0 %v91_v22  ;;  %v253_v6 = vld [vmem:[#allocation6 + $0x10] sm:$0xff]  ;;  %v355_v8 = vld [vmem:[#allocation2 + $0x188] sm:$0xff]  ;;  %v257_v11 = vld [vmem:[#allocation2 + $0x100] sm:$0xff]  ;;  %v352_v16 = vmul.f32 %v350_v10, %v2988_v28 }
  0x3d   :  { %2304 = vmatprep.subr.mxu1 %v71_v23  ;;  %2270 = vmatpush3.msra.mxu0 %v91_v22  ;;  %v254_v9 = vld [vmem:[#allocation6 + $0x90] sm:$0xff]  ;;  %v354_v12 = vld [vmem:[#allocation2 + $0x180] sm:$0xff]  ;;  %v255_v13 = vmul.f32 %v253_v6, %v2988_v28  ;;  %v351_v14 = vld [vmem:[#allocation6 + $0x98] sm:$0xff] }
  0x3e   :  { %2305 = vmatpush3.msra.mxu1 %v71_v23  ;;  %2271 = vmatprep.subr.mxu0 %v90_v24  ;;  %v256_v15 = vmul.f32 %v254_v9, %v2993_v33  ;;  %v466_v17 = vld [vmem:[#allocation2 + $0x278] sm:$0xff]  ;;  %v353_v18 = vmul.f32 %v351_v14, %v2993_v33  ;;  %v465_v20 = vld [vmem:[#allocation2 + $0x270] sm:$0xff]  ;;  %v464_v22 = vld [vmem:[#allocation2 + $0x268] sm:$0xff] }
  0x3f   :  { %2306 = vmatprep.subr.mxu1 %v70_v25  ;;  %2272 = vmatpush3.msra.mxu0 %v90_v24  ;;  %v563_v19 = vld [vmem:[#allocation2 + $0x2f8] sm:$0xff]  ;;  %v562_v21 = vld [vmem:[#allocation2 + $0x2f0] sm:$0xff]  ;;  %v561_v23 = vld [vmem:[#allocation2 + $0x2e8] sm:$0xff] }
  0x40   :  { %2307 = vmatpush3.msra.mxu1 %v70_v25  ;;  %2273 = vmatprep.subr.mxu0 %v89_v26  ;;  %v463_v24 = vld [vmem:[#allocation2 + $0x260] sm:$0xff]  ;;  %v461_v29 = vld [vmem:[#allocation2 + $0x250] sm:$0xff]  ;;  %v557_v32 = vld [vmem:[#allocation2 + $0x2c8] sm:$0xff] }
  0x41   :  { %2308 = vmatprep.subr.mxu1 %v69_v27  ;;  %2274 = vmatpush3.msra.mxu0 %v89_v26  ;;  %v560_v25 = vld [vmem:[#allocation2 + $0x2e0] sm:$0xff]  ;;  %v462_v26 = vld [vmem:[#allocation2 + $0x258] sm:$0xff]  ;;  %v655_v6 = vld [vmem:[#allocation2 + $0x350] sm:$0xff] }
  0x42   :  { %2309 = vmatpush3.msra.mxu1 %v69_v27  ;;  %2275 = vmatprep.subr.mxu0 %v88_v30  ;;  %v559_v27 = vld [vmem:[#allocation2 + $0x2d8] sm:$0xff]  ;;  %v459_v34 = vld [vmem:[#allocation2 + $0x240] sm:$0xff]  ;;  %v751_v9 = vld [vmem:[#allocation2 + $0x3c8] sm:$0xff] }
  0x43   :  { %2310 = vmatprep.subr.mxu1 %v68_v31  ;;  %2276 = vmatpush3.msra.mxu0 %v88_v30  ;;  %v558_v30 = vld [vmem:[#allocation2 + $0x2d0] sm:$0xff]  ;;  %v556_v35 = vld [vmem:[#allocation2 + $0x2c0] sm:$0xff] }
  0x44   :  { %2311 = vmatpush3.msra.mxu1 %v68_v31  ;;  %2277 = vmatprep.subr.mxu0 %v87_v36  ;;  %v460_v31 = vld [vmem:[#allocation2 + $0x248] sm:$0xff]  ;;  %v653_v10 = vld [vmem:[#allocation2 + $0x340] sm:$0xff]  ;;  %v651_v14 = vld [vmem:[#allocation2 + $0x330] sm:$0xff] }
  0x45   :  { %2312 = vmatprep.subr.mxu1 %v67_v37  ;;  %2278 = vmatpush3.msra.mxu0 %v87_v36  ;;  %v458_v36 = vld [vmem:[#allocation2 + $0x238] sm:$0xff] }
  0x46   :  { %2279 = vmatprep.mubr.f32.mxu0 %v85_v38  ;;  %2313 = vmatpush3.msra.mxu1 %v67_v37  ;;  %v555_v37 = vld [vmem:[#allocation2 + $0x2b8] sm:$0xff]  ;;  %v457_v38 = vld [vmem:[#allocation2 + $0x230] sm:$0xff] }
  0x47   :  { %2314 = vmatprep.mubr.f32.mxu1 %v65_v39  ;;  %2280 = vmatmul.mubr.f32.vlgmr.msra.gmra.mxu0 %v86_v40  ;;  %v554_v39 = vld [vmem:[#allocation2 + $0x2b0] sm:$0xff]  ;;  %v456_v40 = vld [vmem:[#allocation2 + $0x228] sm:$0xff] }
  0x48   :  { %2315 = vmatmul.mubr.f32.vlgmr.msra.gmra.mxu1 %v66_v41  ;;  %2317 = vmatprep.subr.mxu0 %v272_v42  ;;  %v553_v41 = vld [vmem:[#allocation2 + $0x2a8] sm:$0xff] }
  0x49   :  { %2352 = vmatprep.subr.mxu1 %v369_v43  ;;  %2318 = vmatpush3.msra.mxu0 %v272_v42  ;;  %v455_v42 = vld [vmem:[#allocation2 + $0x220] sm:$0xff] }
  0x4a   :  { %2353 = vmatpush3.msra.mxu1 %v369_v43  ;;  %2319 = vmatprep.subr.mxu0 %v271_v44  ;;  %v552_v43 = vld [vmem:[#allocation2 + $0x2a0] sm:$0xff] }
  0x4b   :  { %2354 = vmatprep.subr.mxu1 %v368_v45  ;;  %2320 = vmatpush3.msra.mxu0 %v271_v44  ;;  %v454_v44 = vld [vmem:[#allocation2 + $0x218] sm:$0xff] }
  0x4c   :  { %2355 = vmatpush3.msra.mxu1 %v368_v45  ;;  %2321 = vmatprep.subr.mxu0 %v270_v46  ;;  %v551_v45 = vld [vmem:[#allocation2 + $0x298] sm:$0xff] }
  0x4d   :  { %2356 = vmatprep.subr.mxu1 %v367_v47  ;;  %2322 = vmatpush3.msra.mxu0 %v270_v46  ;;  %v453_v46 = vld [vmem:[#allocation2 + $0x210] sm:$0xff] }
  0x4e   :  { %2357 = vmatpush3.msra.mxu1 %v367_v47  ;;  %2323 = vmatprep.subr.mxu0 %v269_v48  ;;  %v550_v47 = vld [vmem:[#allocation2 + $0x290] sm:$0xff] }
  0x4f   :  { %2358 = vmatprep.subr.mxu1 %v366_v49  ;;  %2324 = vmatpush3.msra.mxu0 %v269_v48  ;;  %v447_v48 = vld [vmem:[#allocation6 + $0x20] sm:$0xff] }
  0x50   :  { %2359 = vmatpush3.msra.mxu1 %v366_v49  ;;  %2325 = vmatprep.subr.mxu0 %v268_v50  ;;  %v452_v49 = vld [vmem:[#allocation2 + $0x208] sm:$0xff] }
  0x51   :  { %2360 = vmatprep.subr.mxu1 %v365_v51  ;;  %2326 = vmatpush3.msra.mxu0 %v268_v50  ;;  %v549_v50 = vld [vmem:[#allocation2 + $0x288] sm:$0xff] }
  0x52   :  { %2361 = vmatpush3.msra.mxu1 %v365_v51  ;;  %2327 = vmatprep.subr.mxu0 %v267_v52  ;;  %v448_v51 = vld [vmem:[#allocation6 + $0xa0] sm:$0xff] }
  0x53   :  { %2362 = vmatprep.subr.mxu1 %v364_v53  ;;  %2328 = vmatpush3.msra.mxu0 %v267_v52  ;;  %v544_v52 = vld [vmem:[#allocation6 + $0x28] sm:$0xff] }
  0x54   :  { %2363 = vmatpush3.msra.mxu1 %v364_v53  ;;  %2329 = vmatprep.subr.mxu0 %v266_v54  ;;  %v451_v53 = vld [vmem:[#allocation2 + $0x200] sm:$0xff] }
  0x55   :  { %2364 = vmatprep.subr.mxu1 %v363_v55  ;;  %2330 = vmatpush3.msra.mxu0 %v266_v54  ;;  %v548_v54 = vld [vmem:[#allocation2 + $0x280] sm:$0xff] }
  0x56   :  { %2365 = vmatpush3.msra.mxu1 %v363_v55  ;;  %2331 = vmatprep.subr.mxu0 %v265_v56  ;;  %v449_v55 = vmul.f32 %v447_v48, %v2988_v28  ;;  %v849_v48 = vld [vmem:[#allocation2 + $0x450] sm:$0xff] }
  0x57   :  { %2366 = vmatprep.subr.mxu1 %v362_v57  ;;  %2332 = vmatpush3.msra.mxu0 %v265_v56  ;;  %v545_v56 = vld [vmem:[#allocation6 + $0xa8] sm:$0xff] }
  0x58   :  { %2367 = vmatpush3.msra.mxu1 %v362_v57  ;;  %2333 = vmatprep.subr.mxu0 %v264_v58  ;;  %v450_v57 = vmul.f32 %v448_v51, %v2993_v33  ;;  %v945_v51 = vld [vmem:[#allocation2 + $0x4c8] sm:$0xff] }
  0x59   :  { %2368 = vmatprep.subr.mxu1 %v361_v59  ;;  %2334 = vmatpush3.msra.mxu0 %v264_v58  ;;  %v546_v58 = vmul.f32 %v544_v52, %v2988_v28  ;;  %v847_v52 = vld [vmem:[#allocation2 + $0x440] sm:$0xff] }
  0x5a   :  { %2369 = vmatpush3.msra.mxu1 %v361_v59  ;;  %2335 = vmatprep.subr.mxu0 %v263_v60  ;;  %v660_v59 = vld [vmem:[#allocation2 + $0x378] sm:$0xff] }
  0x5b   :  { %2370 = vmatprep.subr.mxu1 %v360_v61  ;;  %2336 = vmatpush3.msra.mxu0 %v263_v60  ;;  %v547_v60 = vmul.f32 %v545_v56, %v2993_v33  ;;  %v845_v56 = vld [vmem:[#allocation2 + $0x430] sm:$0xff] }
  0x5c   :  { %2371 = vmatpush3.msra.mxu1 %v360_v61  ;;  %2337 = vmatprep.subr.mxu0 %v262_v62  ;;  %v757_v61 = vld [vmem:[#allocation2 + $0x3f8] sm:$0xff] }
  0x5d   :  { %2372 = vmatprep.subr.mxu1 %v359_v63  ;;  %2338 = vmatpush3.msra.mxu0 %v262_v62  ;;  %v659_v62 = vld [vmem:[#allocation2 + $0x370] sm:$0xff] }
  0x5e   :  { %2373 = vmatpush3.msra.mxu1 %v359_v63  ;;  %2339 = vmatprep.subr.mxu0 %v261_v0  ;;  %v756_v63 = vld [vmem:[#allocation2 + $0x3f0] sm:$0xff] }
  0x5f   :  { %2374 = vmatprep.subr.mxu1 %v358_v1  ;;  %2340 = vmatpush3.msra.mxu0 %v261_v0  ;;  %v658_v0 = vld [vmem:[#allocation2 + $0x368] sm:$0xff] }
  0x60   :  { %2375 = vmatpush3.msra.mxu1 %v358_v1  ;;  %2341 = vmatprep.subr.mxu0 %v260_v2  ;;  %v755_v1 = vld [vmem:[#allocation2 + $0x3e8] sm:$0xff] }
  0x61   :  { %2376 = vmatprep.subr.mxu1 %v357_v3  ;;  %2342 = vmatpush3.msra.mxu0 %v260_v2  ;;  %v657_v2 = vld [vmem:[#allocation2 + $0x360] sm:$0xff] }
  0x62   :  { %2377 = vmatpush3.msra.mxu1 %v357_v3  ;;  %2343 = vmatprep.subr.mxu0 %v259_v4  ;;  %v754_v3 = vld [vmem:[#allocation2 + $0x3e0] sm:$0xff] }
  0x63   :  { %2378 = vmatprep.subr.mxu1 %v356_v5  ;;  %2344 = vmatpush3.msra.mxu0 %v259_v4  ;;  %v656_v4 = vld [vmem:[#allocation2 + $0x358] sm:$0xff] }
  0x64   :  { %2379 = vmatpush3.msra.mxu1 %v356_v5  ;;  %2345 = vmatprep.subr.mxu0 %v258_v7  ;;  %v753_v5 = vld [vmem:[#allocation2 + $0x3d8] sm:$0xff] }
  0x65   :  { %2380 = vmatprep.subr.mxu1 %v355_v8  ;;  %2346 = vmatpush3.msra.mxu0 %v258_v7  ;;  %v752_v7 = vld [vmem:[#allocation2 + $0x3d0] sm:$0xff] }
  0x66   :  { %2381 = vmatpush3.msra.mxu1 %v355_v8  ;;  %2347 = vmatprep.subr.mxu0 %v257_v11  ;;  %v654_v8 = vld [vmem:[#allocation2 + $0x348] sm:$0xff] }
  0x67   :  { %2382 = vmatprep.subr.mxu1 %v354_v12  ;;  %2348 = vmatpush3.msra.mxu0 %v257_v11  ;;  %v750_v11 = vld [vmem:[#allocation2 + $0x3c0] sm:$0xff] }
  0x68   :  { %2349 = vmatprep.mubr.f32.mxu0 %v255_v13  ;;  %2383 = vmatpush3.msra.mxu1 %v354_v12  ;;  %v652_v12 = vld [vmem:[#allocation2 + $0x338] sm:$0xff] }
  0x69   :  { %2350 = vmatmul.mubr.f32.vlgmr.msra.gmra.mxu0 %v256_v15  ;;  %2384 = vmatprep.mubr.f32.mxu1 %v352_v16  ;;  %v749_v13 = vld [vmem:[#allocation2 + $0x3b8] sm:$0xff]  ;;  %v748_v15 = vld [vmem:[#allocation2 + $0x3b0] sm:$0xff]  ;;  %v650_v16 = vld [vmem:[#allocation2 + $0x328] sm:$0xff] }
  0x6a   :  { %2387 = vmatprep.subr.mxu0 %v466_v17  ;;  %2422 = vmatprep.subr.mxu1 %v563_v19 }
  0x6b   :  { %2385 = vmatmul.mubr.f32.vlgmr.msra.gmra.mxu1 %v353_v18  ;;  %2388 = vmatpush3.msra.mxu0 %v466_v17  ;;  %v747_v17 = vld [vmem:[#allocation2 + $0x3a8] sm:$0xff]  ;;  %v649_v18 = vld [vmem:[#allocation2 + $0x320] sm:$0xff] }
  0x6c   :  { %2423 = vmatpush3.msra.mxu1 %v563_v19  ;;  %2389 = vmatprep.subr.mxu0 %v465_v20  ;;  %v746_v19 = vld [vmem:[#allocation2 + $0x3a0] sm:$0xff] }
  0x6d   :  { %2424 = vmatprep.subr.mxu1 %v562_v21  ;;  %2390 = vmatpush3.msra.mxu0 %v465_v20  ;;  %v648_v20 = vld [vmem:[#allocation2 + $0x318] sm:$0xff] }
  0x6e   :  { %2425 = vmatpush3.msra.mxu1 %v562_v21  ;;  %2391 = vmatprep.subr.mxu0 %v464_v22  ;;  %v745_v21 = vld [vmem:[#allocation2 + $0x398] sm:$0xff] }
  0x6f   :  { %2426 = vmatprep.subr.mxu1 %v561_v23  ;;  %2392 = vmatpush3.msra.mxu0 %v464_v22  ;;  %v647_v22 = vld [vmem:[#allocation2 + $0x310] sm:$0xff] }
  0x70   :  { %2427 = vmatpush3.msra.mxu1 %v561_v23  ;;  %2393 = vmatprep.subr.mxu0 %v463_v24  ;;  %v744_v23 = vld [vmem:[#allocation2 + $0x390] sm:$0xff] }
  0x71   :  { %2428 = vmatprep.subr.mxu1 %v560_v25  ;;  %2394 = vmatpush3.msra.mxu0 %v463_v24  ;;  %v641_v24 = vld [vmem:[#allocation6 + $0x30] sm:$0xff] }
  0x72   :  { %2429 = vmatpush3.msra.mxu1 %v560_v25  ;;  %2395 = vmatprep.subr.mxu0 %v462_v26  ;;  %v646_v25 = vld [vmem:[#allocation2 + $0x308] sm:$0xff] }
  0x73   :  { %2430 = vmatprep.subr.mxu1 %v559_v27  ;;  %2396 = vmatpush3.msra.mxu0 %v462_v26  ;;  %v743_v26 = vld [vmem:[#allocation2 + $0x388] sm:$0xff] }
  0x74   :  { %2431 = vmatpush3.msra.mxu1 %v559_v27  ;;  %2397 = vmatprep.subr.mxu0 %v461_v29  ;;  %v642_v27 = vld [vmem:[#allocation6 + $0xb0] sm:$0xff] }
  0x75   :  { %2432 = vmatprep.subr.mxu1 %v558_v30  ;;  %2398 = vmatpush3.msra.mxu0 %v461_v29  ;;  %v738_v29 = vld [vmem:[#allocation6 + $0x38] sm:$0xff] }
  0x76   :  { %2433 = vmatpush3.msra.mxu1 %v558_v30  ;;  %2399 = vmatprep.subr.mxu0 %v460_v31  ;;  %v645_v30 = vld [vmem:[#allocation2 + $0x300] sm:$0xff] }
  0x77   :  { %2434 = vmatprep.subr.mxu1 %v557_v32  ;;  %2400 = vmatpush3.msra.mxu0 %v460_v31  ;;  %v742_v31 = vld [vmem:[#allocation2 + $0x380] sm:$0xff] }
  0x78   :  { %2435 = vmatpush3.msra.mxu1 %v557_v32  ;;  %2401 = vmatprep.subr.mxu0 %v459_v34  ;;  %v643_v32 = vmul.f32 %v641_v24, %v2988_v28  ;;  %v1042_v24 = vld [vmem:[#allocation2 + $0x548] sm:$0xff] }
  0x79   :  { %2436 = vmatprep.subr.mxu1 %v556_v35  ;;  %2402 = vmatpush3.msra.mxu0 %v459_v34  ;;  %v739_v34 = vld [vmem:[#allocation6 + $0xb8] sm:$0xff] }
  0x7a   :  { %2437 = vmatpush3.msra.mxu1 %v556_v35  ;;  %2403 = vmatprep.subr.mxu0 %v458_v36  ;;  %v644_v35 = vmul.f32 %v642_v27, %v2993_v33  ;;  %v1138_v27 = vld [vmem:[#allocation2 + $0x5c0] sm:$0xff] }
  0x7b   :  { %2438 = vmatprep.subr.mxu1 %v555_v37  ;;  %2404 = vmatpush3.msra.mxu0 %v458_v36  ;;  %v740_v36 = vmul.f32 %v738_v29, %v2988_v28  ;;  %v1040_v29 = vld [vmem:[#allocation2 + $0x538] sm:$0xff] }
  0x7c   :  { %2439 = vmatpush3.msra.mxu1 %v555_v37  ;;  %2405 = vmatprep.subr.mxu0 %v457_v38  ;;  %v854_v37 = vld [vmem:[#allocation2 + $0x478] sm:$0xff] }
  0x7d   :  { %2440 = vmatprep.subr.mxu1 %v554_v39  ;;  %2406 = vmatpush3.msra.mxu0 %v457_v38  ;;  %v741_v38 = vmul.f32 %v739_v34, %v2993_v33  ;;  %v1038_v34 = vld [vmem:[#allocation2 + $0x528] sm:$0xff] }
  0x7e   :  { %2441 = vmatpush3.msra.mxu1 %v554_v39  ;;  %2407 = vmatprep.subr.mxu0 %v456_v40  ;;  %v951_v39 = vld [vmem:[#allocation2 + $0x4f8] sm:$0xff] }
  0x7f   :  { %2442 = vmatprep.subr.mxu1 %v553_v41  ;;  %2408 = vmatpush3.msra.mxu0 %v456_v40  ;;  %v853_v40 = vld [vmem:[#allocation2 + $0x470] sm:$0xff] }
  0x80   :  { %2443 = vmatpush3.msra.mxu1 %v553_v41  ;;  %2409 = vmatprep.subr.mxu0 %v455_v42  ;;  %v950_v41 = vld [vmem:[#allocation2 + $0x4f0] sm:$0xff] }
  0x81   :  { %2444 = vmatprep.subr.mxu1 %v552_v43  ;;  %2410 = vmatpush3.msra.mxu0 %v455_v42  ;;  %v852_v42 = vld [vmem:[#allocation2 + $0x468] sm:$0xff] }
  0x82   :  { %2445 = vmatpush3.msra.mxu1 %v552_v43  ;;  %2411 = vmatprep.subr.mxu0 %v454_v44  ;;  %v949_v43 = vld [vmem:[#allocation2 + $0x4e8] sm:$0xff] }
  0x83   :  { %2446 = vmatprep.subr.mxu1 %v551_v45  ;;  %2412 = vmatpush3.msra.mxu0 %v454_v44  ;;  %v851_v44 = vld [vmem:[#allocation2 + $0x460] sm:$0xff] }
  0x84   :  { %2447 = vmatpush3.msra.mxu1 %v551_v45  ;;  %2413 = vmatprep.subr.mxu0 %v453_v46  ;;  %v948_v45 = vld [vmem:[#allocation2 + $0x4e0] sm:$0xff] }
  0x85   :  { %2448 = vmatprep.subr.mxu1 %v550_v47  ;;  %2414 = vmatpush3.msra.mxu0 %v453_v46  ;;  %v850_v46 = vld [vmem:[#allocation2 + $0x458] sm:$0xff] }
  0x86   :  { %2449 = vmatpush3.msra.mxu1 %v550_v47  ;;  %2415 = vmatprep.subr.mxu0 %v452_v49  ;;  %v947_v47 = vld [vmem:[#allocation2 + $0x4d8] sm:$0xff] }
  0x87   :  { %2450 = vmatprep.subr.mxu1 %v549_v50  ;;  %2416 = vmatpush3.msra.mxu0 %v452_v49  ;;  %v946_v49 = vld [vmem:[#allocation2 + $0x4d0] sm:$0xff] }
  0x88   :  { %2451 = vmatpush3.msra.mxu1 %v549_v50  ;;  %2417 = vmatprep.subr.mxu0 %v451_v53  ;;  %v848_v50 = vld [vmem:[#allocation2 + $0x448] sm:$0xff] }
  0x89   :  { %2452 = vmatprep.subr.mxu1 %v548_v54  ;;  %2418 = vmatpush3.msra.mxu0 %v451_v53  ;;  %v944_v53 = vld [vmem:[#allocation2 + $0x4c0] sm:$0xff] }
  0x8a   :  { %2419 = vmatprep.mubr.f32.mxu0 %v449_v55  ;;  %2453 = vmatpush3.msra.mxu1 %v548_v54  ;;  %v846_v54 = vld [vmem:[#allocation2 + $0x438] sm:$0xff] }
  0x8b   :  { %2420 = vmatmul.mubr.f32.vlgmr.msra.gmra.mxu0 %v450_v57  ;;  %2454 = vmatprep.mubr.f32.mxu1 %v546_v58  ;;  %v943_v55 = vld [vmem:[#allocation2 + $0x4b8] sm:$0xff]  ;;  %v942_v57 = vld [vmem:[#allocation2 + $0x4b0] sm:$0xff]  ;;  %v844_v58 = vld [vmem:[#allocation2 + $0x428] sm:$0xff] }
  0x8c   :  { %2457 = vmatprep.subr.mxu0 %v660_v59  ;;  %2492 = vmatprep.subr.mxu1 %v757_v61 }
  0x8d   :  { %2455 = vmatmul.mubr.f32.vlgmr.msra.gmra.mxu1 %v547_v60  ;;  %2458 = vmatpush3.msra.mxu0 %v660_v59  ;;  %v941_v59 = vld [vmem:[#allocation2 + $0x4a8] sm:$0xff]  ;;  %v843_v60 = vld [vmem:[#allocation2 + $0x420] sm:$0xff] }
  0x8e   :  { %2493 = vmatpush3.msra.mxu1 %v757_v61  ;;  %2459 = vmatprep.subr.mxu0 %v659_v62  ;;  %v940_v61 = vld [vmem:[#allocation2 + $0x4a0] sm:$0xff] }
  0x8f   :  { %2494 = vmatprep.subr.mxu1 %v756_v63  ;;  %2460 = vmatpush3.msra.mxu0 %v659_v62  ;;  %v842_v62 = vld [vmem:[#allocation2 + $0x418] sm:$0xff] }
  0x90   :  { %2495 = vmatpush3.msra.mxu1 %v756_v63  ;;  %2461 = vmatprep.subr.mxu0 %v658_v0  ;;  %v939_v63 = vld [vmem:[#allocation2 + $0x498] sm:$0xff] }
  0x91   :  { %2496 = vmatprep.subr.mxu1 %v755_v1  ;;  %2462 = vmatpush3.msra.mxu0 %v658_v0  ;;  %v841_v0 = vld [vmem:[#allocation2 + $0x410] sm:$0xff] }
  0x92   :  { %2497 = vmatpush3.msra.mxu1 %v755_v1  ;;  %2463 = vmatprep.subr.mxu0 %v657_v2  ;;  %v938_v1 = vld [vmem:[#allocation2 + $0x490] sm:$0xff] }
  0x93   :  { %2498 = vmatprep.subr.mxu1 %v754_v3  ;;  %2464 = vmatpush3.msra.mxu0 %v657_v2  ;;  %v835_v2 = vld [vmem:[#allocation6 + $0x40] sm:$0xff] }
  0x94   :  { %2499 = vmatpush3.msra.mxu1 %v754_v3  ;;  %2465 = vmatprep.subr.mxu0 %v656_v4  ;;  %v840_v3 = vld [vmem:[#allocation2 + $0x408] sm:$0xff] }
  0x95   :  { %2500 = vmatprep.subr.mxu1 %v753_v5  ;;  %2466 = vmatpush3.msra.mxu0 %v656_v4  ;;  %v937_v4 = vld [vmem:[#allocation2 + $0x488] sm:$0xff] }
  0x96   :  { %2501 = vmatpush3.msra.mxu1 %v753_v5  ;;  %2467 = vmatprep.subr.mxu0 %v655_v6  ;;  %v836_v5 = vld [vmem:[#allocation6 + $0xc0] sm:$0xff] }
  0x97   :  { %2502 = vmatprep.subr.mxu1 %v752_v7  ;;  %2468 = vmatpush3.msra.mxu0 %v655_v6  ;;  %v932_v6 = vld [vmem:[#allocation6 + $0x48] sm:$0xff] }
  0x98   :  { %2503 = vmatpush3.msra.mxu1 %v752_v7  ;;  %2469 = vmatprep.subr.mxu0 %v654_v8  ;;  %v839_v7 = vld [vmem:[#allocation2 + $0x400] sm:$0xff] }
  0x99   :  { %2504 = vmatprep.subr.mxu1 %v751_v9  ;;  %2470 = vmatpush3.msra.mxu0 %v654_v8  ;;  %v936_v8 = vld [vmem:[#allocation2 + $0x480] sm:$0xff] }
  0x9a   :  { %2505 = vmatpush3.msra.mxu1 %v751_v9  ;;  %2471 = vmatprep.subr.mxu0 %v653_v10  ;;  %v837_v9 = vmul.f32 %v835_v2, %v2988_v28  ;;  %v1237_v2 = vld [vmem:[#allocation2 + $0x650] sm:$0xff] }
  0x9b   :  { %2506 = vmatprep.subr.mxu1 %v750_v11  ;;  %2472 = vmatpush3.msra.mxu0 %v653_v10  ;;  %v933_v10 = vld [vmem:[#allocation6 + $0xc8] sm:$0xff] }
  0x9c   :  { %2507 = vmatpush3.msra.mxu1 %v750_v11  ;;  %2473 = vmatprep.subr.mxu0 %v652_v12  ;;  %v838_v11 = vmul.f32 %v836_v5, %v2993_v33  ;;  %v1333_v5 = vld [vmem:[#allocation2 + $0x6c8] sm:$0xff] }
  0x9d   :  { %2508 = vmatprep.subr.mxu1 %v749_v13  ;;  %2474 = vmatpush3.msra.mxu0 %v652_v12  ;;  %v934_v12 = vmul.f32 %v932_v6, %v2988_v28  ;;  %v1143_v28 = vld [vmem:[#allocation2 + $0x5e8] sm:$0xff]  ;;  %v1235_v6 = vld [vmem:[#allocation2 + $0x640] sm:$0xff] }
  0x9e   :  { %2509 = vmatpush3.msra.mxu1 %v749_v13  ;;  %2475 = vmatprep.subr.mxu0 %v651_v14  ;;  %v1048_v13 = vld [vmem:[#allocation2 + $0x578] sm:$0xff] }
  0x9f   :  { %2510 = vmatprep.subr.mxu1 %v748_v15  ;;  %2476 = vmatpush3.msra.mxu0 %v651_v14  ;;  %v935_v14 = vmul.f32 %v933_v10, %v2993_v33  ;;  %v1045_v33 = vld [vmem:[#allocation2 + $0x560] sm:$0xff]  ;;  %v1233_v10 = vld [vmem:[#allocation2 + $0x630] sm:$0xff] }
  0xa0   :  { %2511 = vmatpush3.msra.mxu1 %v748_v15  ;;  %2477 = vmatprep.subr.mxu0 %v650_v16  ;;  %v1145_v15 = vld [vmem:[#allocation2 + $0x5f8] sm:$0xff] }
  0xa1   :  { %2512 = vmatprep.subr.mxu1 %v747_v17  ;;  %2478 = vmatpush3.msra.mxu0 %v650_v16  ;;  %v1047_v16 = vld [vmem:[#allocation2 + $0x570] sm:$0xff] }
  0xa2   :  { %2513 = vmatpush3.msra.mxu1 %v747_v17  ;;  %2479 = vmatprep.subr.mxu0 %v649_v18  ;;  %v1144_v17 = vld [vmem:[#allocation2 + $0x5f0] sm:$0xff] }
  0xa3   :  { %2514 = vmatprep.subr.mxu1 %v746_v19  ;;  %2480 = vmatpush3.msra.mxu0 %v649_v18  ;;  %v1046_v18 = vld [vmem:[#allocation2 + $0x568] sm:$0xff] }
  0xa4   :  { %2515 = vmatpush3.msra.mxu1 %v746_v19  ;;  %2481 = vmatprep.subr.mxu0 %v648_v20  ;;  %v1142_v19 = vld [vmem:[#allocation2 + $0x5e0] sm:$0xff] }
  0xa5   :  { %2516 = vmatprep.subr.mxu1 %v745_v21  ;;  %2482 = vmatpush3.msra.mxu0 %v648_v20  ;;  %v1044_v20 = vld [vmem:[#allocation2 + $0x558] sm:$0xff] }
  0xa6   :  { %2517 = vmatpush3.msra.mxu1 %v745_v21  ;;  %2483 = vmatprep.subr.mxu0 %v647_v22  ;;  %v1141_v21 = vld [vmem:[#allocation2 + $0x5d8] sm:$0xff] }
  0xa7   :  { %2518 = vmatprep.subr.mxu1 %v744_v23  ;;  %2484 = vmatpush3.msra.mxu0 %v647_v22  ;;  %v1043_v22 = vld [vmem:[#allocation2 + $0x550] sm:$0xff] }
  0xa8   :  { %2519 = vmatpush3.msra.mxu1 %v744_v23  ;;  %2485 = vmatprep.subr.mxu0 %v646_v25  ;;  %v1140_v23 = vld [vmem:[#allocation2 + $0x5d0] sm:$0xff] }
  0xa9   :  { %2520 = vmatprep.subr.mxu1 %v743_v26  ;;  %2486 = vmatpush3.msra.mxu0 %v646_v25  ;;  %v1139_v25 = vld [vmem:[#allocation2 + $0x5c8] sm:$0xff] }
  0xaa   :  { %2521 = vmatpush3.msra.mxu1 %v743_v26  ;;  %2487 = vmatprep.subr.mxu0 %v645_v30  ;;  %v1041_v26 = vld [vmem:[#allocation2 + $0x540] sm:$0xff] }
  0xab   :  { %2522 = vmatprep.subr.mxu1 %v742_v31  ;;  %2488 = vmatpush3.msra.mxu0 %v645_v30  ;;  %v1137_v30 = vld [vmem:[#allocation2 + $0x5b8] sm:$0xff] }
  0xac   :  { %2489 = vmatprep.mubr.f32.mxu0 %v643_v32  ;;  %2523 = vmatpush3.msra.mxu1 %v742_v31  ;;  %v1039_v31 = vld [vmem:[#allocation2 + $0x530] sm:$0xff] }
  0xad   :  { %2490 = vmatmul.mubr.f32.vlgmr.msra.gmra.mxu0 %v644_v35  ;;  %2524 = vmatprep.mubr.f32.mxu1 %v740_v36  ;;  %v1136_v32 = vld [vmem:[#allocation2 + $0x5b0] sm:$0xff]  ;;  %v1135_v35 = vld [vmem:[#allocation2 + $0x5a8] sm:$0xff]  ;;  %v1037_v36 = vld [vmem:[#allocation2 + $0x520] sm:$0xff] }
  0xae   :  { %2527 = vmatprep.subr.mxu0 %v854_v37  ;;  %2562 = vmatprep.subr.mxu1 %v951_v39 }
  0xaf   :  { %2525 = vmatmul.mubr.f32.vlgmr.msra.gmra.mxu1 %v741_v38  ;;  %2528 = vmatpush3.msra.mxu0 %v854_v37  ;;  %v1134_v37 = vld [vmem:[#allocation2 + $0x5a0] sm:$0xff]  ;;  %v1036_v38 = vld [vmem:[#allocation2 + $0x518] sm:$0xff] }
  0xb0   :  { %2563 = vmatpush3.msra.mxu1 %v951_v39  ;;  %2529 = vmatprep.subr.mxu0 %v853_v40  ;;  %v1133_v39 = vld [vmem:[#allocation2 + $0x598] sm:$0xff] }
  0xb1   :  { %2564 = vmatprep.subr.mxu1 %v950_v41  ;;  %2530 = vmatpush3.msra.mxu0 %v853_v40  ;;  %v1035_v40 = vld [vmem:[#allocation2 + $0x510] sm:$0xff] }
  0xb2   :  { %2565 = vmatpush3.msra.mxu1 %v950_v41  ;;  %2531 = vmatprep.subr.mxu0 %v852_v42  ;;  %v1132_v41 = vld [vmem:[#allocation2 + $0x590] sm:$0xff] }
  0xb3   :  { %2566 = vmatprep.subr.mxu1 %v949_v43  ;;  %2532 = vmatpush3.msra.mxu0 %v852_v42  ;;  %v1029_v42 = vld [vmem:[#allocation6 + $0x50] sm:$0xff] }
  0xb4   :  { %2567 = vmatpush3.msra.mxu1 %v949_v43  ;;  %2533 = vmatprep.subr.mxu0 %v851_v44  ;;  %v1034_v43 = vld [vmem:[#allocation2 + $0x508] sm:$0xff] }
  0xb5   :  { %2568 = vmatprep.subr.mxu1 %v948_v45  ;;  %2534 = vmatpush3.msra.mxu0 %v851_v44  ;;  %v1131_v44 = vld [vmem:[#allocation2 + $0x588] sm:$0xff] }
  0xb6   :  { %2569 = vmatpush3.msra.mxu1 %v948_v45  ;;  %2535 = vmatprep.subr.mxu0 %v850_v46  ;;  %v1030_v45 = vld [vmem:[#allocation6 + $0xd0] sm:$0xff] }
  0xb7   :  { %2570 = vmatprep.subr.mxu1 %v947_v47  ;;  %2536 = vmatpush3.msra.mxu0 %v850_v46  ;;  %v1126_v46 = vld [vmem:[#allocation6 + $0x58] sm:$0xff] }
  0xb8   :  { %2571 = vmatpush3.msra.mxu1 %v947_v47  ;;  %2537 = vmatprep.subr.mxu0 %v849_v48  ;;  %v1033_v47 = vld [vmem:[#allocation2 + $0x500] sm:$0xff] }
  0xb9   :  { %2572 = vmatprep.subr.mxu1 %v946_v49  ;;  %2538 = vmatpush3.msra.mxu0 %v849_v48  ;;  %v1130_v48 = vld [vmem:[#allocation2 + $0x580] sm:$0xff] }
  0xba   :  { %2573 = vmatpush3.msra.mxu1 %v946_v49  ;;  %2539 = vmatprep.subr.mxu0 %v848_v50  ;;  %v3018_v49 = vld [vmem:[%s3111_s2] sm:$0xff] }
  0xbb   :  { %2574 = vmatprep.subr.mxu1 %v945_v51  ;;  %2540 = vmatpush3.msra.mxu0 %v848_v50  ;;  %v1031_v50 = vmul.f32 %v3018_v49, %v1029_v42  ;;  %v1431_v42 = vld [vmem:[#allocation2 + $0x750] sm:$0xff] }
  0xbc   :  { %2575 = vmatpush3.msra.mxu1 %v945_v51  ;;  %2541 = vmatprep.subr.mxu0 %v847_v52  ;;  %v1127_v51 = vld [vmem:[#allocation6 + $0xd8] sm:$0xff] }
  0xbd   :  { %2576 = vmatprep.subr.mxu1 %v944_v53  ;;  %2542 = vmatpush3.msra.mxu0 %v847_v52  ;;  %v3024_v52 = vld [vmem:[%s3111_s2 + $0x8] sm:$0xff]  ;;  %s2941_s2 = smov 1  }
  0xbe   :  { %2577 = vmatpush3.msra.mxu1 %v944_v53  ;;  %2543 = vmatprep.subr.mxu0 %v846_v54  ;;  %v1032_v53 = vmul.f32 %v3024_v52, %v1030_v45  ;;  %v1527_v45 = vld [vmem:[#allocation2 + $0x7c8] sm:$0xff] }
  0xbf   :  { %2578 = vmatprep.subr.mxu1 %v943_v55  ;;  %2544 = vmatpush3.msra.mxu0 %v846_v54  ;;  %v1128_v54 = vmul.f32 %v3018_v49, %v1126_v46  ;;  %v1429_v46 = vld [vmem:[#allocation2 + $0x740] sm:$0xff] }
  0xc0   :  { %2579 = vmatpush3.msra.mxu1 %v943_v55  ;;  %2545 = vmatprep.subr.mxu0 %v845_v56  ;;  %v1242_v55 = vld [vmem:[#allocation2 + $0x678] sm:$0xff] }
  0xc1   :  { %2580 = vmatprep.subr.mxu1 %v942_v57  ;;  %2546 = vmatpush3.msra.mxu0 %v845_v56  ;;  %v1129_v56 = vmul.f32 %v3024_v52, %v1127_v51  ;;  %v1427_v51 = vld [vmem:[#allocation2 + $0x730] sm:$0xff] }
  0xc2   :  { %2581 = vmatpush3.msra.mxu1 %v942_v57  ;;  %2547 = vmatprep.subr.mxu0 %v844_v58  ;;  %v1339_v57 = vld [vmem:[#allocation2 + $0x6f8] sm:$0xff] }
  0xc3   :  { %2582 = vmatprep.subr.mxu1 %v941_v59  ;;  %2548 = vmatpush3.msra.mxu0 %v844_v58  ;;  %v1241_v58 = vld [vmem:[#allocation2 + $0x670] sm:$0xff] }
  0xc4   :  { %2583 = vmatpush3.msra.mxu1 %v941_v59  ;;  %2549 = vmatprep.subr.mxu0 %v843_v60  ;;  %v1338_v59 = vld [vmem:[#allocation2 + $0x6f0] sm:$0xff] }
  0xc5   :  { %2584 = vmatprep.subr.mxu1 %v940_v61  ;;  %2550 = vmatpush3.msra.mxu0 %v843_v60  ;;  %v1240_v60 = vld [vmem:[#allocation2 + $0x668] sm:$0xff] }
  0xc6   :  { %2585 = vmatpush3.msra.mxu1 %v940_v61  ;;  %2551 = vmatprep.subr.mxu0 %v842_v62  ;;  %v1337_v61 = vld [vmem:[#allocation2 + $0x6e8] sm:$0xff] }
  0xc7   :  { %2586 = vmatprep.subr.mxu1 %v939_v63  ;;  %2552 = vmatpush3.msra.mxu0 %v842_v62  ;;  %v1239_v62 = vld [vmem:[#allocation2 + $0x660] sm:$0xff] }
  0xc8   :  { %2587 = vmatpush3.msra.mxu1 %v939_v63  ;;  %2553 = vmatprep.subr.mxu0 %v841_v0  ;;  %v1336_v63 = vld [vmem:[#allocation2 + $0x6e0] sm:$0xff] }
  0xc9   :  { %2588 = vmatprep.subr.mxu1 %v938_v1  ;;  %2554 = vmatpush3.msra.mxu0 %v841_v0  ;;  %v1238_v0 = vld [vmem:[#allocation2 + $0x658] sm:$0xff] }
  0xca   :  { %2589 = vmatpush3.msra.mxu1 %v938_v1  ;;  %2555 = vmatprep.subr.mxu0 %v840_v3  ;;  %v1335_v1 = vld [vmem:[#allocation2 + $0x6d8] sm:$0xff] }
  0xcb   :  { %2590 = vmatprep.subr.mxu1 %v937_v4  ;;  %2556 = vmatpush3.msra.mxu0 %v840_v3  ;;  %v1334_v3 = vld [vmem:[#allocation2 + $0x6d0] sm:$0xff] }
  0xcc   :  { %2591 = vmatpush3.msra.mxu1 %v937_v4  ;;  %2557 = vmatprep.subr.mxu0 %v839_v7  ;;  %v1236_v4 = vld [vmem:[#allocation2 + $0x648] sm:$0xff] }
  0xcd   :  { %2592 = vmatprep.subr.mxu1 %v936_v8  ;;  %2558 = vmatpush3.msra.mxu0 %v839_v7  ;;  %v1332_v7 = vld [vmem:[#allocation2 + $0x6c0] sm:$0xff] }
  0xce   :  { %2559 = vmatprep.mubr.f32.mxu0 %v837_v9  ;;  %2593 = vmatpush3.msra.mxu1 %v936_v8  ;;  %v1234_v8 = vld [vmem:[#allocation2 + $0x638] sm:$0xff] }
  0xcf   :  { %2560 = vmatmul.mubr.f32.vlgmr.msra.gmra.mxu0 %v838_v11  ;;  %2594 = vmatprep.mubr.f32.mxu1 %v934_v12  ;;  %v1331_v9 = vld [vmem:[#allocation2 + $0x6b8] sm:$0xff]  ;;  %v1330_v11 = vld [vmem:[#allocation2 + $0x6b0] sm:$0xff]  ;;  %v1232_v12 = vld [vmem:[#allocation2 + $0x628] sm:$0xff] }
  0xd0   :  { %2597 = vmatprep.subr.mxu0 %v1048_v13  ;;  %2632 = vmatprep.subr.mxu1 %v1145_v15 }
  0xd1   :  { %2595 = vmatmul.mubr.f32.vlgmr.msra.gmra.mxu1 %v935_v14  ;;  %2598 = vmatpush3.msra.mxu0 %v1048_v13  ;;  %v1329_v13 = vld [vmem:[#allocation2 + $0x6a8] sm:$0xff]  ;;  %v1231_v14 = vld [vmem:[#allocation2 + $0x620] sm:$0xff] }
  0xd2   :  { %2633 = vmatpush3.msra.mxu1 %v1145_v15  ;;  %2599 = vmatprep.subr.mxu0 %v1047_v16  ;;  %v1328_v15 = vld [vmem:[#allocation2 + $0x6a0] sm:$0xff] }
  0xd3   :  { %2634 = vmatprep.subr.mxu1 %v1144_v17  ;;  %2600 = vmatpush3.msra.mxu0 %v1047_v16  ;;  %v1230_v16 = vld [vmem:[#allocation2 + $0x618] sm:$0xff] }
  0xd4   :  { %2635 = vmatpush3.msra.mxu1 %v1144_v17  ;;  %2601 = vmatprep.subr.mxu0 %v1046_v18  ;;  %v1327_v17 = vld [vmem:[#allocation2 + $0x698] sm:$0xff] }
  0xd5   :  { %2636 = vmatprep.subr.mxu1 %v1143_v28  ;;  %2602 = vmatpush3.msra.mxu0 %v1046_v18  ;;  %v1229_v18 = vld [vmem:[#allocation2 + $0x610] sm:$0xff] }
  0xd6   :  { %2637 = vmatpush3.msra.mxu1 %v1143_v28  ;;  %2603 = vmatprep.subr.mxu0 %v1045_v33  ;;  %v1326_v28 = vld [vmem:[#allocation2 + $0x690] sm:$0xff] }
  0xd7   :  { %2638 = vmatprep.subr.mxu1 %v1142_v19  ;;  %2604 = vmatpush3.msra.mxu0 %v1045_v33  ;;  %v1223_v33 = vld [vmem:[#allocation6 + $0x60] sm:$0xff] }
  0xd8   :  { %2639 = vmatpush3.msra.mxu1 %v1142_v19  ;;  %2605 = vmatprep.subr.mxu0 %v1044_v20  ;;  %v1228_v19 = vld [vmem:[#allocation2 + $0x608] sm:$0xff] }
  0xd9   :  { %2640 = vmatprep.subr.mxu1 %v1141_v21  ;;  %2606 = vmatpush3.msra.mxu0 %v1044_v20  ;;  %v1325_v20 = vld [vmem:[#allocation2 + $0x688] sm:$0xff] }
  0xda   :  { %2641 = vmatpush3.msra.mxu1 %v1141_v21  ;;  %2607 = vmatprep.subr.mxu0 %v1043_v22  ;;  %v1224_v21 = vld [vmem:[#allocation6 + $0xe0] sm:$0xff] }
  0xdb   :  { %2642 = vmatprep.subr.mxu1 %v1140_v23  ;;  %2608 = vmatpush3.msra.mxu0 %v1043_v22  ;;  %v1320_v22 = vld [vmem:[#allocation6 + $0x68] sm:$0xff] }
  0xdc   :  { %2643 = vmatpush3.msra.mxu1 %v1140_v23  ;;  %2609 = vmatprep.subr.mxu0 %v1042_v24  ;;  %v1227_v23 = vld [vmem:[#allocation2 + $0x600] sm:$0xff] }
  0xdd   :  { %2644 = vmatprep.subr.mxu1 %v1139_v25  ;;  %2610 = vmatpush3.msra.mxu0 %v1042_v24  ;;  %v1324_v24 = vld [vmem:[#allocation2 + $0x680] sm:$0xff] }
  0xde   :  { %2645 = vmatpush3.msra.mxu1 %v1139_v25  ;;  %2611 = vmatprep.subr.mxu0 %v1041_v26  ;;  %v1225_v25 = vmul.f32 %v3018_v49, %v1223_v33 }
  0xdf   :  { %2646 = vmatprep.subr.mxu1 %v1138_v27  ;;  %2612 = vmatpush3.msra.mxu0 %v1041_v26  ;;  %v1321_v26 = vld [vmem:[#allocation6 + $0xe8] sm:$0xff] }
  0xe0   :  { %2647 = vmatpush3.msra.mxu1 %v1138_v27  ;;  %2613 = vmatprep.subr.mxu0 %v1040_v29  ;;  %v1226_v27 = vmul.f32 %v3024_v52, %v1224_v21 }
  0xe1   :  { %2648 = vmatprep.subr.mxu1 %v1137_v30  ;;  %2614 = vmatpush3.msra.mxu0 %v1040_v29  ;;  %v1322_v29 = vmul.f32 %v3018_v49, %v1320_v22 }
  0xe2   :  { %2649 = vmatpush3.msra.mxu1 %v1137_v30  ;;  %2615 = vmatprep.subr.mxu0 %v1039_v31  ;;  %v1436_v30 = vld [vmem:[#allocation2 + $0x778] sm:$0xff] }
  0xe3   :  { %2650 = vmatprep.subr.mxu1 %v1136_v32  ;;  %2616 = vmatpush3.msra.mxu0 %v1039_v31  ;;  %v1323_v31 = vmul.f32 %v3024_v52, %v1321_v26 }
  0xe4   :  { %2651 = vmatpush3.msra.mxu1 %v1136_v32  ;;  %2617 = vmatprep.subr.mxu0 %v1038_v34  ;;  %v1533_v32 = vld [vmem:[#allocation2 + $0x7f8] sm:$0xff] }
  0xe5   :  { %2652 = vmatprep.subr.mxu1 %v1135_v35  ;;  %2618 = vmatpush3.msra.mxu0 %v1038_v34  ;;  %v1435_v34 = vld [vmem:[#allocation2 + $0x770] sm:$0xff] }
  0xe6   :  { %2653 = vmatpush3.msra.mxu1 %v1135_v35  ;;  %2619 = vmatprep.subr.mxu0 %v1037_v36  ;;  %v1532_v35 = vld [vmem:[#allocation2 + $0x7f0] sm:$0xff] }
  0xe7   :  { %2654 = vmatprep.subr.mxu1 %v1134_v37  ;;  %2620 = vmatpush3.msra.mxu0 %v1037_v36  ;;  %v1434_v36 = vld [vmem:[#allocation2 + $0x768] sm:$0xff] }
  0xe8   :  { %2655 = vmatpush3.msra.mxu1 %v1134_v37  ;;  %2621 = vmatprep.subr.mxu0 %v1036_v38  ;;  %v1531_v37 = vld [vmem:[#allocation2 + $0x7e8] sm:$0xff] }
  0xe9   :  { %2656 = vmatprep.subr.mxu1 %v1133_v39  ;;  %2622 = vmatpush3.msra.mxu0 %v1036_v38  ;;  %v1433_v38 = vld [vmem:[#allocation2 + $0x760] sm:$0xff] }
  0xea   :  { %2657 = vmatpush3.msra.mxu1 %v1133_v39  ;;  %2623 = vmatprep.subr.mxu0 %v1035_v40  ;;  %v1530_v39 = vld [vmem:[#allocation2 + $0x7e0] sm:$0xff] }
  0xeb   :  { %2658 = vmatprep.subr.mxu1 %v1132_v41  ;;  %2624 = vmatpush3.msra.mxu0 %v1035_v40  ;;  %v1432_v40 = vld [vmem:[#allocation2 + $0x758] sm:$0xff] }
  0xec   :  { %2659 = vmatpush3.msra.mxu1 %v1132_v41  ;;  %2625 = vmatprep.subr.mxu0 %v1034_v43  ;;  %v1529_v41 = vld [vmem:[#allocation2 + $0x7d8] sm:$0xff] }
  0xed   :  { %2660 = vmatprep.subr.mxu1 %v1131_v44  ;;  %2626 = vmatpush3.msra.mxu0 %v1034_v43  ;;  %v1528_v43 = vld [vmem:[#allocation2 + $0x7d0] sm:$0xff] }
  0xee   :  { %2661 = vmatpush3.msra.mxu1 %v1131_v44  ;;  %2627 = vmatprep.subr.mxu0 %v1033_v47  ;;  %v1430_v44 = vld [vmem:[#allocation2 + $0x748] sm:$0xff] }
  0xef   :  { %2662 = vmatprep.subr.mxu1 %v1130_v48  ;;  %2628 = vmatpush3.msra.mxu0 %v1033_v47  ;;  %v1526_v47 = vld [vmem:[#allocation2 + $0x7c0] sm:$0xff] }
  0xf0   :  { %2629 = vmatprep.mubr.f32.mxu0 %v1031_v50  ;;  %2663 = vmatpush3.msra.mxu1 %v1130_v48  ;;  %v1428_v48 = vld [vmem:[#allocation2 + $0x738] sm:$0xff] }
  0xf1   :  { %2630 = vmatmul.mubr.f32.vlgmr.msra.gmra.mxu0 %v1032_v53  ;;  %2664 = vmatprep.mubr.f32.mxu1 %v1128_v54  ;;  %v1525_v50 = vld [vmem:[#allocation2 + $0x7b8] sm:$0xff]  ;;  %v1524_v53 = vld [vmem:[#allocation2 + $0x7b0] sm:$0xff]  ;;  %v1426_v54 = vld [vmem:[#allocation2 + $0x728] sm:$0xff] }
  0xf2   :  { %2667 = vmatprep.subr.mxu0 %v1242_v55  ;;  %2702 = vmatprep.subr.mxu1 %v1339_v57 }
  0xf3   :  { %2665 = vmatmul.mubr.f32.vlgmr.msra.gmra.mxu1 %v1129_v56  ;;  %2668 = vmatpush3.msra.mxu0 %v1242_v55  ;;  %v1523_v55 = vld [vmem:[#allocation2 + $0x7a8] sm:$0xff]  ;;  %v1425_v56 = vld [vmem:[#allocation2 + $0x720] sm:$0xff] }
  0xf4   :  { %2703 = vmatpush3.msra.mxu1 %v1339_v57  ;;  %2669 = vmatprep.subr.mxu0 %v1241_v58  ;;  %v1522_v57 = vld [vmem:[#allocation2 + $0x7a0] sm:$0xff] }
  0xf5   :  { %2704 = vmatprep.subr.mxu1 %v1338_v59  ;;  %2670 = vmatpush3.msra.mxu0 %v1241_v58  ;;  %v1424_v58 = vld [vmem:[#allocation2 + $0x718] sm:$0xff] }
  0xf6   :  { %2705 = vmatpush3.msra.mxu1 %v1338_v59  ;;  %2671 = vmatprep.subr.mxu0 %v1240_v60  ;;  %v1521_v59 = vld [vmem:[#allocation2 + $0x798] sm:$0xff] }
  0xf7   :  { %2706 = vmatprep.subr.mxu1 %v1337_v61  ;;  %2672 = vmatpush3.msra.mxu0 %v1240_v60  ;;  %v1423_v60 = vld [vmem:[#allocation2 + $0x710] sm:$0xff] }
  0xf8   :  { %2707 = vmatpush3.msra.mxu1 %v1337_v61  ;;  %2673 = vmatprep.subr.mxu0 %v1239_v62  ;;  %v1520_v61 = vld [vmem:[#allocation2 + $0x790] sm:$0xff] }
  0xf9   :  { %2708 = vmatprep.subr.mxu1 %v1336_v63  ;;  %2674 = vmatpush3.msra.mxu0 %v1239_v62  ;;  %v1417_v62 = vld [vmem:[#allocation6 + $0x70] sm:$0xff] }
  0xfa   :  { %2709 = vmatpush3.msra.mxu1 %v1336_v63  ;;  %2675 = vmatprep.subr.mxu0 %v1238_v0  ;;  %v1422_v63 = vld [vmem:[#allocation2 + $0x708] sm:$0xff] }
  0xfb   :  { %2710 = vmatprep.subr.mxu1 %v1335_v1  ;;  %2676 = vmatpush3.msra.mxu0 %v1238_v0  ;;  %v1519_v0 = vld [vmem:[#allocation2 + $0x788] sm:$0xff] }
  0xfc   :  { %2711 = vmatpush3.msra.mxu1 %v1335_v1  ;;  %2677 = vmatprep.subr.mxu0 %v1237_v2  ;;  %v1514_v1 = vld [vmem:[#allocation6 + $0x78] sm:$0xff] }
  0xfd   :  { %2712 = vmatprep.subr.mxu1 %v1334_v3  ;;  %2678 = vmatpush3.msra.mxu0 %v1237_v2  ;;  %v1418_v2 = vld [vmem:[#allocation6 + $0xf0] sm:$0xff] }
  0xfe   :  { %2713 = vmatpush3.msra.mxu1 %v1334_v3  ;;  %2679 = vmatprep.subr.mxu0 %v1236_v4  ;;  %v1515_v3 = vld [vmem:[#allocation6 + $0xf8] sm:$0xff] }
  0xff   :  { %2714 = vmatprep.subr.mxu1 %v1333_v5  ;;  %2680 = vmatpush3.msra.mxu0 %v1236_v4  ;;  %v1421_v4 = vld [vmem:[#allocation2 + $0x700] sm:$0xff] }
 0x100   :  { %2715 = vmatpush3.msra.mxu1 %v1333_v5  ;;  %2681 = vmatprep.subr.mxu0 %v1235_v6  ;;  %v1518_v5 = vld [vmem:[#allocation2 + $0x780] sm:$0xff] }
 0x101   :  { %2716 = vmatprep.subr.mxu1 %v1332_v7  ;;  %2682 = vmatpush3.msra.mxu0 %v1235_v6  ;;  %v1419_v6 = vmul.f32 %v3018_v49, %v1417_v62 }
 0x102   :  { %2717 = vmatpush3.msra.mxu1 %v1332_v7  ;;  %2683 = vmatprep.subr.mxu0 %v1234_v8  ;;  %v1516_v7 = vmul.f32 %v3018_v49, %v1514_v1  ;;  %v1640_v49 = vld [vmem:[#allocation4 + $0x60] sm:$0xff] }
 0x103   :  { %2718 = vmatprep.subr.mxu1 %v1331_v9  ;;  %2684 = vmatpush3.msra.mxu0 %v1234_v8  ;;  %v1420_v8 = vmul.f32 %v3024_v52, %v1418_v2 }
 0x104   :  { %2719 = vmatpush3.msra.mxu1 %v1331_v9  ;;  %2685 = vmatprep.subr.mxu0 %v1233_v10  ;;  %v1517_v9 = vmul.f32 %v3024_v52, %v1515_v3 }
 0x105   :  { %2720 = vmatprep.subr.mxu1 %v1330_v11  ;;  %2686 = vmatpush3.msra.mxu0 %v1233_v10  ;;  %v1643_v10 = vld [vmem:[#allocation4 + $0x78] sm:$0xff] }
 0x106   :  { %2721 = vmatpush3.msra.mxu1 %v1330_v11  ;;  %2687 = vmatprep.subr.mxu0 %v1232_v12  ;;  %v1642_v11 = vld [vmem:[#allocation4 + $0x70] sm:$0xff] }
 0x107   :  { %2722 = vmatprep.subr.mxu1 %v1329_v13  ;;  %2688 = vmatpush3.msra.mxu0 %v1232_v12  ;;  %v1641_v12 = vld [vmem:[#allocation4 + $0x68] sm:$0xff]  ;;  %v2281_v52 = vpop.f32.mrf.mxu0 }
 0x108   :  { %2723 = vmatpush3.msra.mxu1 %v1329_v13  ;;  %2689 = vmatprep.subr.mxu0 %v1231_v14  ;;  %v1639_v13 = vld [vmem:[#allocation4 + $0x58] sm:$0xff] }
 0x109   :  { %2724 = vmatprep.subr.mxu1 %v1328_v15  ;;  %2690 = vmatpush3.msra.mxu0 %v1231_v14  ;;  %v2316_v14 = vpop.f32.mrf.mxu1 }
 0x10a   :  { %2725 = vmatpush3.msra.mxu1 %v1328_v15  ;;  %2691 = vmatprep.subr.mxu0 %v1230_v16  ;;  %v169_v15 = vpop.f32.mrf.mxu0 }
 0x10b   :  { %2726 = vmatprep.subr.mxu1 %v1327_v17  ;;  %2692 = vmatpush3.msra.mxu0 %v1230_v16 }
 0x10c   :  { %2727 = vmatpush3.msra.mxu1 %v1327_v17  ;;  %2693 = vmatprep.subr.mxu0 %v1229_v18  ;;  %v244_v17 = vpop.f32.mrf.mxu1 }
 0x10d   :  { %2728 = vmatprep.subr.mxu1 %v1326_v28  ;;  %2694 = vmatpush3.msra.mxu0 %v1229_v18  ;;  %v250_v18 = vadd.f32 %v2316_v14, %v2281_v52 }
 0x10e   :  { %2729 = vmatpush3.msra.mxu1 %v1326_v28  ;;  %2695 = vmatprep.subr.mxu0 %v1228_v19 }
 0x10f   :  { %2730 = vmatprep.subr.mxu1 %v1325_v20  ;;  %2696 = vmatpush3.msra.mxu0 %v1228_v19  ;;  %v245_v19 = vadd.f32 %v244_v17, %v169_v15  ;;  %v1638_v17 = vld [vmem:[#allocation4 + $0x50] sm:$0xff] }
 0x110   :  { %2731 = vmatpush3.msra.mxu1 %v1325_v20  ;;  %2697 = vmatprep.subr.mxu0 %v1227_v23 }
 0x111   :  { %2732 = vmatprep.subr.mxu1 %v1324_v24  ;;  %2698 = vmatpush3.msra.mxu0 %v1227_v23 }
 0x112   :  { %2699 = vmatprep.mubr.f32.mxu0 %v1225_v25  ;;  %2733 = vmatpush3.msra.mxu1 %v1324_v24 }
 0x113   :  { %2700 = vmatmul.mubr.f32.vlgmr.msra.gmra.mxu0 %v1226_v27  ;;  %2734 = vmatprep.mubr.f32.mxu1 %v1322_v29 }
 0x114   :  { %2737 = vmatprep.subr.mxu0 %v1436_v30  ;;  %2772 = vmatprep.subr.mxu1 %v1533_v32 }
 0x115   :  { %2735 = vmatmul.mubr.f32.vlgmr.msra.gmra.mxu1 %v1323_v31  ;;  %2738 = vmatpush3.msra.mxu0 %v1436_v30 }
 0x116   :  { %2773 = vmatpush3.msra.mxu1 %v1533_v32  ;;  %2739 = vmatprep.subr.mxu0 %v1435_v34 }
 0x117   :  { %2774 = vmatprep.subr.mxu1 %v1532_v35  ;;  %2740 = vmatpush3.msra.mxu0 %v1435_v34 }
 0x118   :  { %2775 = vmatpush3.msra.mxu1 %v1532_v35  ;;  %2741 = vmatprep.subr.mxu0 %v1434_v36 }
 0x119   :  { %2776 = vmatprep.subr.mxu1 %v1531_v37  ;;  %2742 = vmatpush3.msra.mxu0 %v1434_v36 }
 0x11a   :  { %2777 = vmatpush3.msra.mxu1 %v1531_v37  ;;  %2743 = vmatprep.subr.mxu0 %v1433_v38 }
 0x11b   :  { %2778 = vmatprep.subr.mxu1 %v1530_v39  ;;  %2744 = vmatpush3.msra.mxu0 %v1433_v38 }
 0x11c   :  { %2779 = vmatpush3.msra.mxu1 %v1530_v39  ;;  %2745 = vmatprep.subr.mxu0 %v1432_v40 }
 0x11d   :  { %2780 = vmatprep.subr.mxu1 %v1529_v41  ;;  %2746 = vmatpush3.msra.mxu0 %v1432_v40 }
 0x11e   :  { %2781 = vmatpush3.msra.mxu1 %v1529_v41  ;;  %2747 = vmatprep.subr.mxu0 %v1431_v42 }
 0x11f   :  { %2782 = vmatprep.subr.mxu1 %v1528_v43  ;;  %2748 = vmatpush3.msra.mxu0 %v1431_v42 }
 0x120   :  { %2783 = vmatpush3.msra.mxu1 %v1528_v43  ;;  %2749 = vmatprep.subr.mxu0 %v1430_v44 }
 0x121   :  { %2784 = vmatprep.subr.mxu1 %v1527_v45  ;;  %2750 = vmatpush3.msra.mxu0 %v1430_v44 }
 0x122   :  { %2785 = vmatpush3.msra.mxu1 %v1527_v45  ;;  %2751 = vmatprep.subr.mxu0 %v1429_v46 }
 0x123   :  { %2786 = vmatprep.subr.mxu1 %v1526_v47  ;;  %2752 = vmatpush3.msra.mxu0 %v1429_v46 }
 0x124   :  { %2787 = vmatpush3.msra.mxu1 %v1526_v47  ;;  %2753 = vmatprep.subr.mxu0 %v1428_v48 }
 0x125   :  { %2788 = vmatprep.subr.mxu1 %v1525_v50  ;;  %2754 = vmatpush3.msra.mxu0 %v1428_v48 }
 0x126   :  { %2789 = vmatpush3.msra.mxu1 %v1525_v50  ;;  %2755 = vmatprep.subr.mxu0 %v1427_v51 }
 0x127   :  { %2790 = vmatprep.subr.mxu1 %v1524_v53  ;;  %2756 = vmatpush3.msra.mxu0 %v1427_v51 }
 0x128   :  { %2791 = vmatpush3.msra.mxu1 %v1524_v53  ;;  %2757 = vmatprep.subr.mxu0 %v1426_v54 }
 0x129   :  { %2792 = vmatprep.subr.mxu1 %v1523_v55  ;;  %2758 = vmatpush3.msra.mxu0 %v1426_v54  ;;  %v2351_v16 = vpop.f32.mrf.mxu0 }
 0x12a   :  { %2793 = vmatpush3.msra.mxu1 %v1523_v55  ;;  %2759 = vmatprep.subr.mxu0 %v1425_v56  ;;  %v349_v20 = vadd.f32 %v2351_v16, %v250_v18  ;;  %v1637_v18 = vld [vmem:[#allocation4 + $0x48] sm:$0xff] }
 0x12b   :  { %2794 = vmatprep.subr.mxu1 %v1522_v57  ;;  %2760 = vmatpush3.msra.mxu0 %v1425_v56  ;;  %v2386_v28 = vpop.f32.mrf.mxu1  ;;  %v339_v33 = vpop.f32.mrf.mxu0 }
 0x12c   :  { %2795 = vmatpush3.msra.mxu1 %v1522_v57  ;;  %2761 = vmatprep.subr.mxu0 %v1424_v58  ;;  %v348_v22 = vadd.f32 %v339_v33, %v245_v19  ;;  %v446_v24 = vadd.f32 %v2386_v28, %v349_v20  ;;  %v1636_v28 = vld [vmem:[#allocation4 + $0x40] sm:$0xff]  ;;  %v1635_v33 = vld [vmem:[#allocation4 + $0x38] sm:$0xff]  ;;  %v1634_v19 = vld [vmem:[#allocation4 + $0x30] sm:$0xff] }
 0x12d   :  { %2796 = vmatprep.subr.mxu1 %v1521_v59  ;;  %2762 = vmatpush3.msra.mxu0 %v1424_v58  ;;  %v436_v23 = vpop.f32.mrf.mxu1  ;;  %v1633_v20 = vld [vmem:[#allocation4 + $0x28] sm:$0xff] }
 0x12e   :  { %2797 = vmatpush3.msra.mxu1 %v1521_v59  ;;  %2763 = vmatprep.subr.mxu0 %v1423_v60  ;;  %v445_v27 = vadd.f32 %v436_v23, %v348_v22  ;;  %v1631_v22 = vld [vmem:[#allocation4 + $0x18] sm:$0xff]  ;;  %v1630_v23 = vld [vmem:[#allocation4 + $0x10] sm:$0xff] }
 0x12f   :  { %2798 = vmatprep.subr.mxu1 %v1520_v61  ;;  %2764 = vmatpush3.msra.mxu0 %v1423_v60 }
 0x130   :  { %2799 = vmatpush3.msra.mxu1 %v1520_v61  ;;  %2765 = vmatprep.subr.mxu0 %v1422_v63 }
 0x131   :  { %2800 = vmatprep.subr.mxu1 %v1519_v0  ;;  %2766 = vmatpush3.msra.mxu0 %v1422_v63 }
 0x132   :  { %2801 = vmatpush3.msra.mxu1 %v1519_v0  ;;  %2767 = vmatprep.subr.mxu0 %v1421_v4 }
 0x133   :  { %2802 = vmatprep.subr.mxu1 %v1518_v5  ;;  %2768 = vmatpush3.msra.mxu0 %v1421_v4 }
 0x134   :  { %2769 = vmatprep.mubr.f32.mxu0 %v1419_v6  ;;  %2803 = vmatpush3.msra.mxu1 %v1518_v5  ;;  %v1613_v6 = vlaneseq }
 0x135   :  { %2804 = vmatprep.mubr.f32.mxu1 %v1516_v7  ;;  %2770 = vmatmul.mubr.f32.vlgmr.msra.gmra.mxu0 %v1420_v8 }
 0x136   :  { %2805 = vmatmul.mubr.f32.vlgmr.msra.gmra.mxu1 %v1517_v9  ;;  %2807 = vmatprep.subr.mxu0 %v1643_v10 }
 0x137   :  { %2808 = vmatpush3.msra.mxu0 %v1643_v10 }
 0x138   :  { %2809 = vmatprep.subr.mxu0 %v1642_v11 }
 0x139   :  { %2810 = vmatpush3.msra.mxu0 %v1642_v11 }
 0x13a   :  { %2811 = vmatprep.subr.mxu0 %v1641_v12 }
 0x13b   :  { %2812 = vmatpush3.msra.mxu0 %v1641_v12  ;;  %v1614_v12 = vand.u32 127, %v1613_v6 }
 0x13c   :  { %2813 = vmatprep.subr.mxu0 %v1640_v49 }
 0x13d   :  { %2814 = vmatpush3.msra.mxu0 %v1640_v49  ;;  %vm1615_vm0 = vcmp.lt.s32.totalorder %v1614_v12, 64 }
 0x13e   :  { %2815 = vmatprep.subr.mxu0 %v1639_v13 }
 0x13f   :  { %2816 = vmatpush3.msra.mxu0 %v1639_v13 }
 0x140   :  { %2817 = vmatprep.subr.mxu0 %v1638_v17 }
 0x141   :  { %2818 = vmatpush3.msra.mxu0 %v1638_v17 }
 0x142   :  { %2819 = vmatprep.subr.mxu0 %v1637_v18 }
 0x143   :  { %2820 = vmatpush3.msra.mxu0 %v1637_v18 }
 0x144   :  { %2821 = vmatprep.subr.mxu0 %v1636_v28 }
 0x145   :  { %2822 = vmatpush3.msra.mxu0 %v1636_v28 }
 0x146   :  { %2823 = vmatprep.subr.mxu0 %v1635_v33 }
 0x147   :  { %2824 = vmatpush3.msra.mxu0 %v1635_v33 }
 0x148   :  { %2825 = vmatprep.subr.mxu0 %v1634_v19 }
 0x149   :  { %2826 = vmatpush3.msra.mxu0 %v1634_v19 }
 0x14a   :  { %2827 = vmatprep.subr.mxu0 %v1633_v20 }
 0x14b   :  { %v2421_v21 = vpop.f32.mrf.mxu0  ;;  %2828 = vmatpush3.msra.mxu0 %v1633_v20 }
 0x14c   :  { %v543_v29 = vadd.f32 %v2421_v21, %v446_v24  ;;  %v1632_v21 = vld [vmem:[#allocation4 + $0x20] sm:$0xff]  ;;  %v1629_v24 = vld [vmem:[#allocation4 + $0x8] sm:$0xff] }
 0x14d   :  { %v2456_v25 = vpop.f32.mrf.mxu1  ;;  %v533_v26 = vpop.f32.mrf.mxu0  ;;  %2829 = vmatprep.subr.mxu0 %v1632_v21 }
 0x14e   :  { %v542_v31 = vadd.f32 %v533_v26, %v445_v27  ;;  %v640_v34 = vadd.f32 %v2456_v25, %v543_v29  ;;  %2830 = vmatpush3.msra.mxu0 %v1632_v21  ;;  %v1628_v25 = vld [vmem:[#allocation4] sm:$0xff] }
 0x14f   :  { %v630_v32 = vpop.f32.mrf.mxu1  ;;  %2831 = vmatprep.subr.mxu0 %v1631_v22 }
 0x150   :  { %v639_v37 = vadd.f32 %v630_v32, %v542_v31  ;;  %2832 = vmatpush3.msra.mxu0 %v1631_v22 }
 0x151   :  { %2833 = vmatprep.subr.mxu0 %v1630_v23 }
 0x152   :  { %2834 = vmatpush3.msra.mxu0 %v1630_v23 }
 0x153   :  { %2835 = vmatprep.subr.mxu0 %v1629_v24 }
 0x154   :  { %2836 = vmatpush3.msra.mxu0 %v1629_v24 }
 0x155   :  { %2837 = vmatprep.subr.mxu0 %v1628_v25 }
 0x156   :  { %2838 = vmatpush3.msra.mxu0 %v1628_v25 }
 0x16d   :  { %v2491_v30 = vpop.f32.mrf.mxu0 }
 0x16e   :  { %v737_v38 = vadd.f32 %v2491_v30, %v640_v34 }
 0x16f   :  { %v2526_v35 = vpop.f32.mrf.mxu1  ;;  %v727_v36 = vpop.f32.mrf.mxu0 }
 0x170   :  { %v736_v40 = vadd.f32 %v727_v36, %v639_v37  ;;  %v834_v42 = vadd.f32 %v2526_v35, %v737_v38 }
 0x171   :  { %v824_v41 = vpop.f32.mrf.mxu1 }
 0x172   :  { %v833_v45 = vadd.f32 %v824_v41, %v736_v40  ;;  %v3052_v40 = vld [vmem:[%s3113_s4 + $0x8] sm:$0xff] }
 0x18f   :  { %v2561_v39 = vpop.f32.mrf.mxu0 }
 0x190   :  { %v931_v46 = vadd.f32 %v2561_v39, %v834_v42 }
 0x191   :  { %v2596_v43 = vpop.f32.mrf.mxu1  ;;  %v921_v44 = vpop.f32.mrf.mxu0 }
 0x192   :  { %v930_v48 = vadd.f32 %v921_v44, %v833_v45  ;;  %v1028_v51 = vadd.f32 %v2596_v43, %v931_v46 }
 0x193   :  { %v1018_v50 = vpop.f32.mrf.mxu1 }
 0x194   :  { %v1027_v55 = vadd.f32 %v1018_v50, %v930_v48 }
 0x1b1   :  { %v2631_v47 = vpop.f32.mrf.mxu0 }
 0x1b2   :  { %v1125_v56 = vadd.f32 %v2631_v47, %v1028_v51 }
 0x1b3   :  { %v2666_v53 = vpop.f32.mrf.mxu1  ;;  %v1115_v54 = vpop.f32.mrf.mxu0 }
 0x1b4   :  { %v1124_v58 = vadd.f32 %v1115_v54, %v1027_v55  ;;  %v1222_v60 = vadd.f32 %v2666_v53, %v1125_v56 }
 0x1b5   :  { %v1212_v59 = vpop.f32.mrf.mxu1 }
 0x1b6   :  { %v1221_v63 = vadd.f32 %v1212_v59, %v1124_v58 }
 0x1d3   :  { %v2701_v57 = vpop.f32.mrf.mxu0 }
 0x1d4   :  { %v1319_v0 = vadd.f32 %v2701_v57, %v1222_v60  ;;  %v3071_v60 = vld [vmem:[%s3113_s4] sm:$0xff] }
 0x1d5   :  { %v2736_v61 = vpop.f32.mrf.mxu1  ;;  %v1309_v62 = vpop.f32.mrf.mxu0 }
 0x1d6   :  { %v1318_v1 = vadd.f32 %v1309_v62, %v1221_v63  ;;  %v1416_v3 = vadd.f32 %v2736_v61, %v1319_v0 }
 0x1d7   :  { %v1406_v2 = vpop.f32.mrf.mxu1 }
 0x1d8   :  { %v1415_v7 = vadd.f32 %v1406_v2, %v1318_v1 }
 0x1f5   :  { %v2771_v4 = vpop.f32.mrf.mxu0 }
 0x1f6   :  { %v2806_v5 = vpop.f32.mrf.mxu1  ;;  %v1513_v8 = vadd.f32 %v2771_v4, %v1416_v3 }
 0x1f7   :  { %v1503_v9 = vpop.f32.mrf.mxu0 }
 0x1f8   :  { %v1512_v10 = vadd.f32 %v1503_v9, %v1415_v7  ;;  %v1600_v11 = vpop.f32.mrf.mxu1  ;;  %v1610_v49 = vadd.f32 %v2806_v5, %v1513_v8 }
 0x1fa   :  { %v1609_v13 = vadd.f32 %v1600_v11, %v1512_v10  ;;  %v1612_v14 = vmul.f32 0.17677669, %v1610_v49 }
 0x1fc   :  { %v1611_v52 = vmul.f32 0.17677669, %v1609_v13  ;;  %v1617_v16 = vsel %vm1615_vm0, %v1612_v14, -inf }
 0x1fe   :  { %v1616_v15 = vsel %vm1615_vm0, %v1611_v52, -inf }
 0x1ff   :  { %1618 = vmax.xlane.f32.xlu0 %v1616_v15 }
 0x203   :  { %1620 = vmax.xlane.f32.xlu0 %v1617_v16 }
 0x288   :  { %v1619_v26 = vpop.xlane.xlu0 %1618 }
 0x289   :  { %v1622_v27 = vsub.f32 %v1616_v15, %v1619_v26 }
 0x28b   :  { %v1624_v29 = vmul.f32 1.442695, %v1622_v27 }
 0x28c   :  { %v1621_v30 = vpop.xlane.xlu0 %1620 }
 0x28d   :  { %2853 = vpow2.f32 %v1624_v29  ;;  %v1623_v31 = vsub.f32 %v1617_v16, %v1621_v30 }
 0x28f   :  { %v1626_v32 = vmul.f32 1.442695, %v1623_v31 }
 0x291   :  { %2855 = vpow2.f32 %v1626_v32 }
 0x29a   :  { %v2854_v34 = vpop.eup %2853 }
 0x29b   :  { %2839 = vmatprep.mubr.f32.mxu0 %v2854_v34 }
 0x29e   :  { %v2856_v35 = vpop.eup %2855 }
 0x29f   :  { %2840 = vmatmul.mubr.f32.vlgmr.msra.gmra.mxu0 %v2856_v35 }
 0x35f   :  { %v3037_v36 = vpop.f32.mrf.mxu0 }
 0x361   :  { %v3039_v37 = vpop.f32.mrf.mxu0 }
 0x362   :  { %2857 = vrcp.f32 %v3039_v37 }
 0x363   :  { %2859 = vrcp.f32 %v3037_v36 }
 0x36f   :  { %v2858_v38 = vpop.eup %2857 }
 0x370   :  { %1745 = vrot.lane.b32.xlu0 %v2858_v38, %s2941_s2  ;;  %1753 = vrot.lane.b32.xlu1 %v2858_v38, %s2942_s16  ;;  %v2860_v39 = vpop.eup %2859 }
 0x374   :  { %1725 = vrot.lane.b32.xlu0 %v2860_v39, %s2941_s2  ;;  %1755 = vrot.lane.b32.xlu1 %v2860_v39, %s2942_s16 }
 0x378   :  { %1733 = vrot.lane.b32.xlu0 %v2860_v39, %s2942_s16  ;;  %1747 = vrot.lane.b32.xlu1 %v2860_v39, %s2941_s2 }
 0x37c   :  { %1849 = vrot.lane.b32.xlu0 %v3052_v40, %s2943_s19  ;;  %1783 = vrot.lane.b32.xlu1 %v2860_v39, %s2944_s20 }
 0x380   :  { %1763 = vrot.lane.b32.xlu0 %v2860_v39, %s2945_s21  ;;  %1781 = vrot.lane.b32.xlu1 %v2858_v38, %s2944_s20 }
 0x3e2   :  { %v1746_v41 = vpop.permute.xlu0 %1745  ;;  %v1754_v42 = vpop.permute.xlu1 %1753 }
 0x3e3   :  { %v1759_v43 = vmul.f32 %v1754_v42, %v3039_v37  ;;  %v1751_v61 = vmul.f32 %v1746_v41, %v3039_v37 }
 0x3e5   :  { %v1789_v44 = vmul.f32 %v1759_v43, %v1759_v43  ;;  %v1769_v62 = vmul.f32 %v1751_v61, %v1751_v61 }
 0x3e6   :  { %v1726_v45 = vpop.permute.xlu0 %1725  ;;  %v1756_v46 = vpop.permute.xlu1 %1755 }
 0x3e7   :  { %v1760_v47 = vmul.f32 %v3037_v36, %v1756_v46  ;;  %1793 = vrot.lane.b32.xlu1 %v1789_v44, %s2942_s16  ;;  %v1730_v57 = vmul.f32 %v3037_v36, %v1726_v45 }
 0x3e9   :  { %v1790_v48 = vmul.f32 %v1760_v47, %v1760_v47 }
 0x3ea   :  { %v1734_v50 = vpop.permute.xlu0 %1733  ;;  %v1748_v51 = vpop.permute.xlu1 %1747 }
 0x3eb   :  { %v1752_v53 = vmul.f32 %v3037_v36, %v1748_v51  ;;  %1795 = vrot.lane.b32.xlu1 %v1790_v48, %s2942_s16  ;;  %v1738_v54 = vmul.f32 %v3037_v36, %v1734_v50 }
 0x3ed   :  { %v1770_v55 = vmul.f32 %v1752_v53, %v1752_v53 }
 0x3ee   :  { %v1850_v56 = vpop.permute.xlu0 %1849  ;;  %v1784_v63 = vpop.permute.xlu1 %1783 }
 0x3ef   :  { %v1866_v58 = vmul.f32 %v1850_v56, %v1738_v54  ;;  %1723 = vrot.lane.b32.xlu1 %v2858_v38, %s2941_s2  ;;  %1775 = vrot.lane.b32.xlu0 %v1770_v55, %s2942_s16  ;;  %v1854_v59 = vmul.f32 %v1850_v56, %v1730_v57  ;;  %v1788_v4 = vmul.f32 %v3037_v36, %v1784_v63 }
 0x3f2   :  { %v1782_v0 = vpop.permute.xlu1 %1781  ;;  %v1764_v22 = vpop.permute.xlu0 %1763 }
 0x3f3   :  { %1731 = vrot.lane.b32.xlu1 %v2858_v38, %s2942_s16  ;;  %1859 = vrot.lane.b32.xlu0 %v1854_v59, %s2943_s19  ;;  %v1787_v1 = vmul.f32 %v1782_v0, %v3039_v37  ;;  %v1768_v31 = vmul.f32 %v3037_v36, %v1764_v22 }
 0x3f7   :  { %1847 = vrot.lane.b32.xlu1 %v3071_v60, %s2943_s19 }
 0x3fb   :  { %1761 = vrot.lane.b32.xlu1 %v2858_v38, %s2945_s21 }
 0x3ff   :  { %1773 = vrot.lane.b32.xlu1 %v1769_v62, %s2942_s16 }
 0x459   :  { %v1794_v2 = vpop.permute.xlu1 %1793 }
 0x45a   :  { %v1799_v3 = vsub.f32 %v1787_v1, %v1794_v2 }
 0x45c   :  { %v1817_v5 = vmax.f32 %v1799_v3, 1e-10 }
 0x45d   :  { %v1796_v6 = vpop.permute.xlu1 %1795 }
 0x45e   :  { %2861 = vrsqrt.f32 %v1817_v5  ;;  %v1800_v7 = vsub.f32 %v1788_v4, %v1796_v6  ;;  %vm1821_vm1 = vcmp.eq.f32.partialorder %v1817_v5, inf  ;;  %v1824_v14 = vand.u32 2147483648, %v1817_v5 }
 0x45f   :  { %vm1823_vm2 = vcmp.eq.f32.partialorder %v1817_v5, 0.0 }
 0x460   :  { %v1818_v8 = vmax.f32 %v1800_v7, 1e-10 }
 0x461   :  { %v1724_v9 = vpop.permute.xlu1 %1723  ;;  %v1776_v23 = vpop.permute.xlu0 %1775 }
 0x462   :  { %2863 = vrsqrt.f32 %v1818_v8  ;;  %v1729_v11 = vmul.f32 %v1724_v9, %v3039_v37  ;;  %vm1828_vm3 = vcmp.eq.f32.partialorder %v1818_v8, inf  ;;  %v1831_v33 = vand.u32 2147483648, %v1818_v8 }
 0x463   :  { %vm1830_vm4 = vcmp.eq.f32.partialorder %v1818_v8, 0.0  ;;  %v1780_v32 = vsub.f32 %v1768_v31, %v1776_v23 }
 0x465   :  { %v1732_v10 = vpop.permute.xlu1 %1731  ;;  %v1860_v24 = vpop.permute.xlu0 %1859  ;;  %v1802_v35 = vmax.f32 %v1780_v32, 1e-10 }
 0x466   :  { %v1737_v18 = vmul.f32 %v1732_v10, %v3039_v37  ;;  %v1864_v25 = vadd.f32 %v1860_v24, %v3052_v40 }
 0x467   :  { %vm1812_vm7 = vcmp.eq.f32.partialorder %v1802_v35, inf  ;;  %v1815_v50 = vand.u32 2147483648, %v1802_v35  ;;  %vm1814_vm8 = vcmp.eq.f32.partialorder %v1802_v35, 0.0 }
 0x469   :  { %v1848_v12 = vpop.permute.xlu1 %1847 }
 0x46a   :  { %v1853_v49 = vmul.f32 %v1848_v12, %v1729_v11  ;;  %v1865_v19 = vmul.f32 %v1848_v12, %v1737_v18 }
 0x46b   :  { %v2862_v13 = vpop.eup %2861 }
 0x46c   :  { %1857 = vrot.lane.b32.xlu1 %v1853_v49, %s2943_s19  ;;  %v1820_v52 = vmul.f32 %v2862_v13, %v1817_v5 }
 0x46d   :  { %v1762_v26 = vpop.permute.xlu1 %1761 }
 0x46e   :  { %v1822_v15 = vsel %vm1821_vm1, %v1817_v5, %v1820_v52  ;;  %v1767_v29 = vmul.f32 %v1762_v26, %v3039_v37 }
 0x46f   :  { %v2864_v16 = vpop.eup %2863  ;;  %v1825_v17 = vsel %vm1823_vm2, %v1824_v14, %v1822_v15 }
 0x470   :  { %1835 = vrot.lane.b32.xlu1 %v1825_v17, %s2943_s19  ;;  %v1827_v28 = vmul.f32 %v2864_v16, %v1818_v8 }
 0x471   :  { %v1774_v27 = vpop.permute.xlu1 %1773 }
 0x472   :  { %v1829_v20 = vsel %vm1828_vm3, %v1818_v8, %v1827_v28  ;;  %v1779_v30 = vsub.f32 %v1767_v29, %v1774_v27 }
 0x473   :  { %v1832_v21 = vsel %vm1830_vm4, %v1831_v33, %v1829_v20 }
 0x474   :  { %1837 = vrot.lane.b32.xlu0 %v1832_v21, %s2943_s19  ;;  %1869 = vrot.lane.b32.xlu1 %v1865_v19, %s2943_s19  ;;  %v1801_v34 = vmax.f32 %v1779_v30, 1e-10 }
 0x476   :  { %2865 = vrsqrt.f32 %v1801_v34  ;;  %vm1805_vm5 = vcmp.eq.f32.partialorder %v1801_v34, inf  ;;  %v1808_v46 = vand.u32 2147483648, %v1801_v34  ;;  %vm1807_vm6 = vcmp.eq.f32.partialorder %v1801_v34, 0.0 }
 0x477   :  { %2867 = vrsqrt.f32 %v1802_v35 }
 0x478   :  { %1871 = vrot.lane.b32.xlu0 %v1866_v58, %s2943_s19  ;;  %1879 = vrot.lane.b32.xlu1 %v1729_v11, %s2943_s19 }
 0x47c   :  { %1881 = vrot.lane.b32.xlu0 %v1730_v57, %s2943_s19  ;;  %1887 = vrot.lane.b32.xlu1 %v1737_v18, %s2943_s19 }
 0x480   :  { %1889 = vrot.lane.b32.xlu0 %v1738_v54, %s2943_s19 }
 0x483   :  { %v2866_v38 = vpop.eup %2865 }
 0x484   :  { %1905 = vrot.lane.b32.xlu0 %v1864_v25, %s2945_s21  ;;  %v1804_v39 = vmul.f32 %v2866_v38, %v1801_v34  ;;  %v2868_v41 = vpop.eup %2867 }
 0x485   :  { %v1811_v45 = vmul.f32 %v2868_v41, %v1802_v35 }
 0x486   :  { %v1806_v44 = vsel %vm1805_vm5, %v1801_v34, %v1804_v39 }
 0x487   :  { %v1809_v37 = vsel %vm1807_vm6, %v1808_v46, %v1806_v44  ;;  %v1813_v48 = vsel %vm1812_vm7, %v1802_v35, %v1811_v45 }
 0x488   :  { %v1816_v51 = vsel %vm1814_vm8, %v1815_v50, %v1813_v48 }
 0x4de   :  { %v1858_v42 = vpop.permute.xlu1 %1857 }
 0x4df   :  { %v1863_v43 = vadd.f32 %v1858_v42, %v3071_v60 }
 0x4e1   :  { %1903 = vrot.lane.b32.xlu1 %v1863_v43, %s2945_s21 }
 0x4e2   :  { %v1836_v36 = vpop.permute.xlu1 %1835 }
 0x4e3   :  { %v1841_v47 = vadd.f32 %v1836_v36, %v1809_v37 }
 0x4e5   :  { %1895 = vrot.lane.b32.xlu1 %v1841_v47, %s2943_s19 }
 0x4e6   :  { %v1838_v53 = vpop.permute.xlu0 %1837  ;;  %v1870_v54 = vpop.permute.xlu1 %1869 }
 0x4e7   :  { %v1842_v55 = vadd.f32 %v1838_v53, %v1816_v51  ;;  %v1875_v56 = vadd.f32 %v1870_v54, %v3071_v60 }
 0x4e9   :  { %1897 = vrot.lane.b32.xlu0 %v1842_v55, %s2943_s19  ;;  %1911 = vrot.lane.b32.xlu1 %v1875_v56, %s2945_s21 }
 0x4ea   :  { %v1872_v57 = vpop.permute.xlu0 %1871  ;;  %v1880_v59 = vpop.permute.xlu1 %1879 }
 0x4eb   :  { %v1876_v58 = vadd.f32 %v1872_v57, %v3052_v40 }
 0x4ed   :  { %1913 = vrot.lane.b32.xlu0 %v1876_v58, %s2945_s21 }
 0x4ee   :  { %v1882_v61 = vpop.permute.xlu0 %1881  ;;  %v1888_v62 = vpop.permute.xlu1 %1887 }
 0x4ef   :  { %v1918_v1 = vsel %vm1917_vm9, %v1880_v59, %v1888_v62 }
 0x4f2   :  { %v1890_v63 = vpop.permute.xlu0 %1889 }
 0x4f3   :  { %v1919_v4 = vsel %vm1917_vm9, %v1882_v61, %v1890_v63 }
 0x4f6   :  { %v1906_v2 = vpop.permute.xlu0 %1905 }
 0x553   :  { %v1904_v0 = vpop.permute.xlu1 %1903 }
 0x557   :  { %v1896_v3 = vpop.permute.xlu1 %1895 }
 0x558   :  { %v1921_v60 = vsel %vm1920_vm10, %v1918_v1, %v1896_v3 }
 0x559   :  { %v1924_v6 = vsel %vm1923_vm11, %v1921_v60, %v1904_v0 }
 0x55b   :  { %v1898_v5 = vpop.permute.xlu0 %1897  ;;  %v1912_v40 = vpop.permute.xlu1 %1911 }
 0x55c   :  { %v1922_v7 = vsel %vm1920_vm10, %v1919_v4, %v1898_v5  ;;  %v1927_v8 = vsel %vm1926_vm12, %v1924_v6, %v1912_v40 }
 0x55d   :  { %v1930_v9 = vsel %vm1929_vm13, %v1927_v8, 0.0  ;;  %v1925_v10 = vsel %vm1923_vm11, %v1922_v7, %v1906_v2 }
 0x55e   :  { %1933 = vst.msk [vmem:[%s3114_s5] sm:$0xff] %vm1932_vm14, %v1930_v9 }
 0x55f   :  { %v1914_v11 = vpop.permute.xlu0 %1913 }
 0x560   :  { %v1928_v12 = vsel %vm1926_vm12, %v1925_v10, %v1914_v11 }
 0x561   :  { %v1931_v49 = vsel %vm1929_vm13, %v1928_v12, 0.0 }
 0x562   :  { %1934 = vst.msk [vmem:[%s3114_s5 + $0x8] sm:$0xff] %vm1932_vm14, %v1931_v49 }
 0x563   :  { %1939 = vsyncpa [#allocation3], 1 }
 0x564   :  { %1940 = vsyncpa [#allocation5], 1 }

</bundles_post_ra>
